<compile_context>
chip_gen: v7x
topology: tpu7x:2x2x1
jax: 0.10.0
libtpu: 0.0.40
codegen_flags: <defaults>
</compile_context>

<pallas_src>
import functools

import jax
import jax.numpy as jnp
from jax import lax
from jax.experimental import pallas as pl
from jax.experimental.pallas import tpu as pltpu

LEAKY_SLOPE = 0.01   # torch.nn.LeakyReLU default negative_slope
LANE = 128
SUBLANE = 8


def _leaky(x):
    return jnp.where(x >= 0, x, LEAKY_SLOPE * x)


def _round_up(n, m):
    return ((n + m - 1) // m) * m


def _pad_to(a, shape):
    return jnp.pad(a, [(0, t - s) for s, t in zip(a.shape, shape)])


# ------------------------------ fused kernel ------------------------------
def encoder_kernel(*args, plan, kernel_size):
    """One batch element: all CausalConvolutionBlocks + max-pool over L, fused.

    args = (x_ref, <per-layer weight refs...>, o_ref, pad_scr)
      x_ref:   (1, L, c_in)                input (f32), channels NOT padded
      per layer l (static plan[l]):
        w1: (K, ci_pad, co_pad) bf16    b1: (1, co_pad) f32
        w2: (K, co_pad, co_pad) bf16    b2: (1, co_pad) f32
        [wr: (ci_pad, co_pad) bf16      br: (1, co_pad) f32]   iff has_proj
      o_ref:   (1, 1, co_last_pad) f32     max over L of the last activation
      pad_scr: (pad_head + L, C_max) bf16  zero causal head + staged activation
    """
    x_ref = args[0]
    o_ref = args[-2]
    pad_scr = args[-1]
    layer_refs = args[1:-2]

    K = kernel_size
    L = x_ref.shape[1]
    c_in = x_ref.shape[2]
    C_max = pad_scr.shape[1]
    pad_head = pad_scr.shape[0] - L

    # Zero the causal head (shared by every tap of every conv of every layer).
    # Unconditional so each grid step is self-contained even if the batch grid
    # axis is split across TensorCores.
    pad_scr[0:pad_head, :] = jnp.zeros((pad_head, C_max), pad_scr.dtype)

    # Stage the layer-0 input, lane-padded in VMEM (no padded HBM slab):
    # zero the padded width once, then overwrite the real channels
    # (one-time masked store, c_in < 128).
    ci0 = plan[0]["ci_pad"]
    pad_scr[pad_head:pad_head + L, 0:ci0] = jnp.zeros((L, ci0), pad_scr.dtype)
    pad_scr[pad_head:pad_head + L, 0:c_in] = x_ref[0].astype(pad_scr.dtype)

    def causal_conv(w_ref, b_ref, d, ci, co):
        # K accumulated MXU matmuls over direct static slices of the padded
        # scratch (a tap shift s >= L reads only zero rows, which is correct).
        acc = None
        for j in range(K):
            s = (K - 1 - j) * d
            tap = pad_scr[pad_head - s:pad_head - s + L, 0:ci]        # bf16
            y = jnp.dot(tap, w_ref[j], preferred_element_type=jnp.float32)
            acc = y if acc is None else acc + y
        return acc + b_ref[...]                                       # f32

    h = None           # None => layer input lives only in pad_scr (layer 0)
    ref_idx = 0
    for lp in plan:
        ci, co, d = lp["ci_pad"], lp["co_pad"], lp["dilation"]
        if lp["has_proj"]:
            (w1_ref, b1_ref, w2_ref, b2_ref,
             wr_ref, br_ref) = layer_refs[ref_idx:ref_idx + 6]
            ref_idx += 6
        else:
            w1_ref, b1_ref, w2_ref, b2_ref = layer_refs[ref_idx:ref_idx + 4]
            ref_idx += 4

        if h is not None:   # stage this layer's input under the zero head
            pad_scr[pad_head:pad_head + L, 0:ci] = h.astype(pad_scr.dtype)

        a1 = _leaky(causal_conv(w1_ref, b1_ref, d, ci, co))

        # Residual — read before conv2 re-stages the scratch region.
        if lp["has_proj"]:
            s0 = pad_scr[pad_head:pad_head + L, 0:ci]       # already-bf16 s=0 tap
            # TODO(synk): on v6e/v7x fuse this 1x1 conv into conv1's s=0 tap
            # weight (widen to 2*co output lanes) to fill the 256-wide MXU pass.
            res = (jnp.dot(s0, wr_ref[...], preferred_element_type=jnp.float32)
                   + br_ref[...])
        else:
            # torch uses an identity residual when in_channels == out_channels.
            res = h if h is not None else \
                pad_scr[pad_head:pad_head + L, 0:ci].astype(jnp.float32)

        pad_scr[pad_head:pad_head + L, 0:co] = a1.astype(pad_scr.dtype)
        a2 = _leaky(causal_conv(w2_ref, b2_ref, d, co, co))

        # torch CausalConvolutionBlock default (final=False): no extra ReLU.
        h = a2 + res

    # AdaptiveMaxPool1d(1) over the length axis; SqueezeChannels then just
    # drops the pooled length-1 axis (shape-only, done wrapper-side).
    o_ref[0] = jnp.max(h, axis=0, keepdims=True).astype(o_ref.dtype)


# ------------------------------- wrapper -----------------------------------
def pack_params(params, input_size, kernel_size):
    """Pad/stack/cast parameters once (hoisted out of the forward call)."""
    K = kernel_size
    plan, flat = [], []
    ci = input_size
    for p in params:
        co = p["w1"].shape[2]
        ci_pad = _round_up(ci, LANE)
        co_pad = _round_up(co, LANE)
        has_proj = p["wr"] is not None
        plan.append(dict(ci=ci, co=co, ci_pad=ci_pad, co_pad=co_pad,
                         dilation=int(p["dilation"]), has_proj=has_proj))
        flat.append(_pad_to(p["w1"], (K, ci_pad, co_pad)).astype(jnp.bfloat16))
        flat.append(_pad_to(p["b1"], (1, co_pad)).astype(jnp.float32))
        flat.append(_pad_to(p["w2"], (K, co_pad, co_pad)).astype(jnp.bfloat16))
        flat.append(_pad_to(p["b2"], (1, co_pad)).astype(jnp.float32))
        if has_proj:
            flat.append(_pad_to(p["wr"], (ci_pad, co_pad)).astype(jnp.bfloat16))
            flat.append(_pad_to(p["br"], (1, co_pad)).astype(jnp.float32))
        ci = co
    return flat, tuple(plan)


def causal_cnn_encoder_forward(x, packed, plan, kernel_size):
    """CausalCNN stack + AdaptiveMaxPool1d(1) + SqueezeChannels.

    x: (B, L, c_in) -> (B, c_out_last).  torch works in (B, C, L); working in
    (B, L, C) makes its permutes cancel.
    """
    B, L, c_in = x.shape
    K = kernel_size
    max_d = max(lp["dilation"] for lp in plan)
    pad_head = _round_up(max((K - 1) * max_d, 1), SUBLANE)
    C_max = max(max(lp["ci_pad"], lp["co_pad"]) for lp in plan)
    co_last_pad = plan[-1]["co_pad"]
    c_last = plan[-1]["co"]

    def full_spec(a):
        return pl.BlockSpec(a.shape, lambda b, nd=a.ndim: (0,) * nd)
    # TODO(synk): on v7x, single-buffer these constant-index weight blocks
    # (pipeline_mode=pl.Buffered(1)) to reclaim VMEM for larger L tiles.

    in_specs = ([pl.BlockSpec((1, L, c_in), lambda b: (b, 0, 0))]
                + [full_spec(a) for a in packed])

    kernel = functools.partial(encoder_kernel, plan=plan, kernel_size=K)

    # Scoped-VMEM budget: double-buffered blocks + scratch + headroom.
    blk = 2 * L * c_in * x.dtype.itemsize
    blk += sum(2 * a.size * a.dtype.itemsize for a in packed)
    blk += 2 * co_last_pad * 4
    scr = (pad_head + L) * C_max * 2
    vmem_limit = int(min(max(blk + scr + (8 << 20), 16 << 20), 64 << 20))

    # TODO(synk): for long sequences, add a second "parallel" grid axis tiling
    # L with a (K-1)*max_dilation causal halo (bounds VMEM on v7x's 64 MiB and
    # keeps both of its TensorCores busy when B is small); conversely, when L
    # is small, block several batch elements per grid step to amortize MXU
    # fill/drain.
    out = pl.pallas_call(
        kernel,
        out_shape=jax.ShapeDtypeStruct((B, 1, co_last_pad), jnp.float32),
        grid=(B,),
        in_specs=in_specs,
        out_specs=pl.BlockSpec((1, 1, co_last_pad), lambda b: (b, 0, 0)),
        scratch_shapes=[pltpu.VMEM((pad_head + L, C_max), jnp.bfloat16)],
        compiler_params=pltpu.CompilerParams(
            dimension_semantics=("parallel",),
            vmem_limit_bytes=vmem_limit),
    )(x, *packed)

    # SqueezeChannels: drop the pooled length-1 axis; trim channel padding.
    # TODO(synk): CausalCNNEncoder's final Linear(reduced_size, out_channels)
    # is a tiny GEMV on these pooled features and is left to XLA.
    return out[:, 0, :c_last]


def init_params(key, input_size, num_channels, kernel_size):
    """Deterministic synthetic parameters mirroring CausalCNN's __init__.

    Weights stored as (K, Cin, Cout) = transpose of torch's (Cout, Cin, K).
    The 1x1 residual conv exists only when in_channels != out_channels
    (otherwise torch uses an identity residual).
    """
    params = []
    c_in = input_size
    for i, c_out in enumerate(num_channels):
        keys = jax.random.split(jax.random.fold_in(key, i), 6)
        s1 = 1.0 / float(c_in * kernel_size) ** 0.5
        s2 = 1.0 / float(c_out * kernel_size) ** 0.5
        sr = 1.0 / float(c_in) ** 0.5
        if c_in != c_out:
            wr = sr * jax.random.normal(keys[4], (c_in, c_out), jnp.float32)
            br = sr * jax.random.normal(keys[5], (1, c_out), jnp.float32)
        else:
            wr, br = None, None
        params.append(dict(
            w1=s1 * jax.random.normal(keys[0], (kernel_size, c_in, c_out), jnp.float32),
            b1=s1 * jax.random.normal(keys[1], (1, c_out), jnp.float32),
            w2=s2 * jax.random.normal(keys[2], (kernel_size, c_out, c_out), jnp.float32),
            b2=s2 * jax.random.normal(keys[3], (1, c_out), jnp.float32),
            wr=wr, br=br, dilation=2 ** i,
        ))
        c_in = c_out
    return params


# --------------------- pure-JAX reference (validation) ---------------------
def reference_forward(x, params, kernel_size, quantize):
    """CausalCNN -> AdaptiveMaxPool1d(1) -> squeeze, in torch (B, C, L) layout.

    quantize=True mirrors the kernel's bf16 matmul operands (f32 accumulation);
    quantize=False is the full-f32 torch-equivalent forward.
    """
    K = kernel_size

    def q(a):
        return a.astype(jnp.bfloat16).astype(jnp.float32) if quantize else a

    h = q(jnp.transpose(x, (0, 2, 1)))                        # (B, C, L)
    for p in params:
        d = int(p["dilation"])
        pad = (K - 1) * d

        def conv(inp, w_kio, b):
            w_oik = q(jnp.transpose(w_kio, (2, 1, 0)))        # (Cout, Cin, K)
            dn = lax.conv_dimension_numbers(inp.shape, w_oik.shape,
                                            ("NCH", "OIH", "NCH"))
            y = lax.conv_general_dilated(
                q(inp), w_oik, window_strides=(1,), padding=[(pad, 0)],
                rhs_dilation=(d,), dimension_numbers=dn,
                precision=lax.Precision.HIGHEST)
            return y + b.reshape(1, -1, 1)

        a1 = _leaky(conv(h, p["w1"], p["b1"]))
        a2 = _leaky(conv(a1, p["w2"], p["b2"]))
        if p["wr"] is None:
            res = h                                           # identity residual
        else:
            res = (jnp.einsum("bcl,co->bol", q(h), q(p["wr"]),
                              precision=lax.Precision.HIGHEST)
                   + p["br"].reshape(1, -1, 1))
        h = a2 + res                                          # no extra ReLU
    return jnp.max(h, axis=2)                                 # pool + squeeze


if __name__ == "__main__":
    B, L = 2, 16
    input_size = 4
    num_channels = [8, 8, 12]     # last entry plays the role of reduced_size
    kernel_size = 2

    key = jax.random.PRNGKey(0)
    kx, kp = jax.random.split(key)
    x = jax.random.normal(kx, (B, L, input_size), jnp.float32)
    params = init_params(kp, input_size, num_channels, kernel_size)

    packed, plan = pack_params(params, input_size, kernel_size)   # runs once
    out = causal_cnn_encoder_forward(x, packed, plan, kernel_size)
    out = jax.block_until_ready(out)

    assert out.shape == (B, num_channels[-1]), out.shape
    ref_q = reference_forward(x, params, kernel_size, quantize=True)
    err_q = float(jnp.max(jnp.abs(out - ref_q)))
    assert jnp.allclose(out, ref_q, atol=1e-3, rtol=1e-3), err_q
    ref_f = reference_forward(x, params, kernel_size, quantize=False)
    err_f = float(jnp.max(jnp.abs(out - ref_f)))
    assert jnp.allclose(out, ref_f, atol=1e-1, rtol=1e-1), err_f
    print("KERNEL_OK")
</pallas_src>

<mosaic_0001>
module attributes {stable_mosaic.version = 11 : i64} {
  func.func @encoder_kernel(%arg0: i32, %arg1: memref<1x16x4xf32, #tpu.memory_space<vmem>>, %arg2: memref<2x128x128xbf16, #tpu.memory_space<vmem>>, %arg3: memref<1x128xf32, #tpu.memory_space<vmem>>, %arg4: memref<2x128x128xbf16, #tpu.memory_space<vmem>>, %arg5: memref<1x128xf32, #tpu.memory_space<vmem>>, %arg6: memref<128x128xbf16, #tpu.memory_space<vmem>>, %arg7: memref<1x128xf32, #tpu.memory_space<vmem>>, %arg8: memref<2x128x128xbf16, #tpu.memory_space<vmem>>, %arg9: memref<1x128xf32, #tpu.memory_space<vmem>>, %arg10: memref<2x128x128xbf16, #tpu.memory_space<vmem>>, %arg11: memref<1x128xf32, #tpu.memory_space<vmem>>, %arg12: memref<2x128x128xbf16, #tpu.memory_space<vmem>>, %arg13: memref<1x128xf32, #tpu.memory_space<vmem>>, %arg14: memref<2x128x128xbf16, #tpu.memory_space<vmem>>, %arg15: memref<1x128xf32, #tpu.memory_space<vmem>>, %arg16: memref<128x128xbf16, #tpu.memory_space<vmem>>, %arg17: memref<1x128xf32, #tpu.memory_space<vmem>>, %arg18: memref<1x1x128xf32, #tpu.memory_space<vmem>>, %arg19: memref<24x128xbf16, #tpu.memory_space<vmem>>) attributes {dimension_semantics = [#tpu.dimension_semantics<parallel>], iteration_bounds = array<i64: 2>, scalar_prefetch = 0 : i64, scratch_operands = 1 : i64, tpu.core_type = #tpu.core_type<tc>, window_params = [{transform_indices = @transform_0, window_bounds = array<i64: 1, 16, 4>}, {pipeline_mode = #tpu.pipeline_mode<synchronous>, transform_indices = @transform_1, window_bounds = array<i64: 2, 128, 128>}, {pipeline_mode = #tpu.pipeline_mode<synchronous>, transform_indices = @transform_2, window_bounds = array<i64: 1, 128>}, {pipeline_mode = #tpu.pipeline_mode<synchronous>, transform_indices = @transform_3, window_bounds = array<i64: 2, 128, 128>}, {pipeline_mode = #tpu.pipeline_mode<synchronous>, transform_indices = @transform_4, window_bounds = array<i64: 1, 128>}, {pipeline_mode = #tpu.pipeline_mode<synchronous>, transform_indices = @transform_5, window_bounds = array<i64: 128, 128>}, {pipeline_mode = #tpu.pipeline_mode<synchronous>, transform_indices = @transform_6, window_bounds = array<i64: 1, 128>}, {pipeline_mode = #tpu.pipeline_mode<synchronous>, transform_indices = @transform_7, window_bounds = array<i64: 2, 128, 128>}, {pipeline_mode = #tpu.pipeline_mode<synchronous>, transform_indices = @transform_8, window_bounds = array<i64: 1, 128>}, {pipeline_mode = #tpu.pipeline_mode<synchronous>, transform_indices = @transform_9, window_bounds = array<i64: 2, 128, 128>}, {pipeline_mode = #tpu.pipeline_mode<synchronous>, transform_indices = @transform_10, window_bounds = array<i64: 1, 128>}, {pipeline_mode = #tpu.pipeline_mode<synchronous>, transform_indices = @transform_11, window_bounds = array<i64: 2, 128, 128>}, {pipeline_mode = #tpu.pipeline_mode<synchronous>, transform_indices = @transform_12, window_bounds = array<i64: 1, 128>}, {pipeline_mode = #tpu.pipeline_mode<synchronous>, transform_indices = @transform_13, window_bounds = array<i64: 2, 128, 128>}, {pipeline_mode = #tpu.pipeline_mode<synchronous>, transform_indices = @transform_14, window_bounds = array<i64: 1, 128>}, {pipeline_mode = #tpu.pipeline_mode<synchronous>, transform_indices = @transform_15, window_bounds = array<i64: 128, 128>}, {pipeline_mode = #tpu.pipeline_mode<synchronous>, transform_indices = @transform_16, window_bounds = array<i64: 1, 128>}, {transform_indices = @transform_17, window_bounds = array<i64: 1, 1, 128>}]} {
    %cst = arith.constant 0.000000e+00 : bf16
    %0 = vector.broadcast %cst : bf16 to vector<8x128xbf16>
    %c0 = arith.constant 0 : index
    %c0_0 = arith.constant 0 : index
    %1 = vector.load %arg19[%c0, %c0_0] : memref<24x128xbf16, #tpu.memory_space<vmem>>, vector<8x128xbf16>
    tpu.vector_store %arg19[%c0, %c0_0], %0 {strides = array<i32>} : memref<24x128xbf16, #tpu.memory_space<vmem>>, vector<8x128xbf16>,
    %cst_1 = arith.constant 0.000000e+00 : bf16
    %2 = vector.broadcast %cst_1 : bf16 to vector<16x128xbf16>
    %c8 = arith.constant 8 : index
    %c0_2 = arith.constant 0 : index
    %3 = vector.load %arg19[%c8, %c0_2] : memref<24x128xbf16, #tpu.memory_space<vmem>>, vector<16x128xbf16>
    tpu.vector_store %arg19[%c8, %c0_2], %2 {strides = array<i32>} : memref<24x128xbf16, #tpu.memory_space<vmem>>, vector<16x128xbf16>,
    %c0_3 = arith.constant 0 : index
    %c0_4 = arith.constant 0 : index
    %c0_5 = arith.constant 0 : index
    %4 = vector.load %arg1[%c0_3, %c0_4, %c0_5] : memref<1x16x4xf32, #tpu.memory_space<vmem>>, vector<1x16x4xf32>
    %5 = vector.shape_cast %4 : vector<1x16x4xf32> to vector<16x4xf32>
    %6 = arith.truncf %5 : vector<16x4xf32> to vector<16x4xbf16>
    %c8_6 = arith.constant 8 : index
    %c0_7 = arith.constant 0 : index
    %7 = vector.load %arg19[%c8_6, %c0_7] : memref<24x128xbf16, #tpu.memory_space<vmem>>, vector<16x4xbf16>
    tpu.vector_store %arg19[%c8_6, %c0_7], %6 {strides = array<i32>} : memref<24x128xbf16, #tpu.memory_space<vmem>>, vector<16x4xbf16>,
    %c7 = arith.constant 7 : index
    %c0_8 = arith.constant 0 : index
    %8 = vector.load %arg19[%c7, %c0_8] : memref<24x128xbf16, #tpu.memory_space<vmem>>, vector<16x128xbf16>
    %c0_9 = arith.constant 0 : index
    %c0_10 = arith.constant 0 : index
    %c0_11 = arith.constant 0 : index
    %9 = vector.load %arg2[%c0_9, %c0_10, %c0_11] : memref<2x128x128xbf16, #tpu.memory_space<vmem>>, vector<1x128x128xbf16>
    %10 = vector.shape_cast %9 : vector<1x128x128xbf16> to vector<128x128xbf16>
    %cst_12 = arith.constant dense<0.000000e+00> : vector<16x128xf32>
    %11 = tpu.matmul %8, %10, %cst_12 {dimension_numbers = #tpu.dot_dimension_numbers<[1], [0], [0], [1], [0, 0, 1, 1], [], []>} : vector<16x128xbf16>, vector<128x128xbf16>, vector<16x128xf32> -> vector<16x128xf32>
    %c8_13 = arith.constant 8 : index
    %c0_14 = arith.constant 0 : index
    %12 = vector.load %arg19[%c8_13, %c0_14] : memref<24x128xbf16, #tpu.memory_space<vmem>>, vector<16x128xbf16>
    %c1 = arith.constant 1 : index
    %c0_15 = arith.constant 0 : index
    %c0_16 = arith.constant 0 : index
    %13 = vector.load %arg2[%c1, %c0_15, %c0_16] : memref<2x128x128xbf16, #tpu.memory_space<vmem>>, vector<1x128x128xbf16>
    %14 = vector.shape_cast %13 : vector<1x128x128xbf16> to vector<128x128xbf16>
    %cst_17 = arith.constant dense<0.000000e+00> : vector<16x128xf32>
    %15 = tpu.matmul %12, %14, %cst_17 {dimension_numbers = #tpu.dot_dimension_numbers<[1], [0], [0], [1], [0, 0, 1, 1], [], []>} : vector<16x128xbf16>, vector<128x128xbf16>, vector<16x128xf32> -> vector<16x128xf32>
    %16 = arith.addf %11, %15 : vector<16x128xf32>
    %c0_18 = arith.constant 0 : index
    %c0_19 = arith.constant 0 : index
    %17 = vector.load %arg3[%c0_18, %c0_19] : memref<1x128xf32, #tpu.memory_space<vmem>>, vector<1x128xf32>
    %18 = vector.broadcast %17 : vector<1x128xf32> to vector<16x128xf32>
    %19 = arith.addf %16, %18 : vector<16x128xf32>
    %cst_20 = arith.constant 0.000000e+00 : f32
    %20 = vector.broadcast %cst_20 : f32 to vector<16x128xf32>
    %21 = arith.cmpf oge, %19, %20 : vector<16x128xf32>
    %cst_21 = arith.constant 0.00999999977 : f32
    %22 = vector.broadcast %cst_21 : f32 to vector<16x128xf32>
    %23 = arith.mulf %22, %19 : vector<16x128xf32>
    %24 = arith.select %21, %19, %23 : vector<16x128xi1>, vector<16x128xf32>
    %c8_22 = arith.constant 8 : index
    %c0_23 = arith.constant 0 : index
    %25 = vector.load %arg19[%c8_22, %c0_23] : memref<24x128xbf16, #tpu.memory_space<vmem>>, vector<16x128xbf16>
    %c0_24 = arith.constant 0 : index
    %c0_25 = arith.constant 0 : index
    %26 = vector.load %arg6[%c0_24, %c0_25] : memref<128x128xbf16, #tpu.memory_space<vmem>>, vector<128x128xbf16>
    %cst_26 = arith.constant dense<0.000000e+00> : vector<16x128xf32>
    %27 = tpu.matmul %25, %26, %cst_26 {dimension_numbers = #tpu.dot_dimension_numbers<[1], [0], [0], [1], [0, 0, 1, 1], [], []>} : vector<16x128xbf16>, vector<128x128xbf16>, vector<16x128xf32> -> vector<16x128xf32>
    %c0_27 = arith.constant 0 : index
    %c0_28 = arith.constant 0 : index
    %28 = vector.load %arg7[%c0_27, %c0_28] : memref<1x128xf32, #tpu.memory_space<vmem>>, vector<1x128xf32>
    %29 = vector.broadcast %28 : vector<1x128xf32> to vector<16x128xf32>
    %30 = arith.addf %27, %29 : vector<16x128xf32>
    %31 = arith.truncf %24 : vector<16x128xf32> to vector<16x128xbf16>
    %c8_29 = arith.constant 8 : index
    %c0_30 = arith.constant 0 : index
    %32 = vector.load %arg19[%c8_29, %c0_30] : memref<24x128xbf16, #tpu.memory_space<vmem>>, vector<16x128xbf16>
    tpu.vector_store %arg19[%c8_29, %c0_30], %31 {strides = array<i32>} : memref<24x128xbf16, #tpu.memory_space<vmem>>, vector<16x128xbf16>,
    %c7_31 = arith.constant 7 : index
    %c0_32 = arith.constant 0 : index
    %33 = vector.load %arg19[%c7_31, %c0_32] : memref<24x128xbf16, #tpu.memory_space<vmem>>, vector<16x128xbf16>
    %c0_33 = arith.constant 0 : index
    %c0_34 = arith.constant 0 : index
    %c0_35 = arith.constant 0 : index
    %34 = vector.load %arg4[%c0_33, %c0_34, %c0_35] : memref<2x128x128xbf16, #tpu.memory_space<vmem>>, vector<1x128x128xbf16>
    %35 = vector.shape_cast %34 : vector<1x128x128xbf16> to vector<128x128xbf16>
    %cst_36 = arith.constant dense<0.000000e+00> : vector<16x128xf32>
    %36 = tpu.matmul %33, %35, %cst_36 {dimension_numbers = #tpu.dot_dimension_numbers<[1], [0], [0], [1], [0, 0, 1, 1], [], []>} : vector<16x128xbf16>, vector<128x128xbf16>, vector<16x128xf32> -> vector<16x128xf32>
    %c8_37 = arith.constant 8 : index
    %c0_38 = arith.constant 0 : index
    %37 = vector.load %arg19[%c8_37, %c0_38] : memref<24x128xbf16, #tpu.memory_space<vmem>>, vector<16x128xbf16>
    %c1_39 = arith.constant 1 : index
    %c0_40 = arith.constant 0 : index
    %c0_41 = arith.constant 0 : index
    %38 = vector.load %arg4[%c1_39, %c0_40, %c0_41] : memref<2x128x128xbf16, #tpu.memory_space<vmem>>, vector<1x128x128xbf16>
    %39 = vector.shape_cast %38 : vector<1x128x128xbf16> to vector<128x128xbf16>
    %cst_42 = arith.constant dense<0.000000e+00> : vector<16x128xf32>
    %40 = tpu.matmul %37, %39, %cst_42 {dimension_numbers = #tpu.dot_dimension_numbers<[1], [0], [0], [1], [0, 0, 1, 1], [], []>} : vector<16x128xbf16>, vector<128x128xbf16>, vector<16x128xf32> -> vector<16x128xf32>
    %41 = arith.addf %36, %40 : vector<16x128xf32>
    %c0_43 = arith.constant 0 : index
    %c0_44 = arith.constant 0 : index
    %42 = vector.load %arg5[%c0_43, %c0_44] : memref<1x128xf32, #tpu.memory_space<vmem>>, vector<1x128xf32>
    %43 = vector.broadcast %42 : vector<1x128xf32> to vector<16x128xf32>
    %44 = arith.addf %41, %43 : vector<16x128xf32>
    %cst_45 = arith.constant 0.000000e+00 : f32
    %45 = vector.broadcast %cst_45 : f32 to vector<16x128xf32>
    %46 = arith.cmpf oge, %44, %45 : vector<16x128xf32>
    %cst_46 = arith.constant 0.00999999977 : f32
    %47 = vector.broadcast %cst_46 : f32 to vector<16x128xf32>
    %48 = arith.mulf %47, %44 : vector<16x128xf32>
    %49 = arith.select %46, %44, %48 : vector<16x128xi1>, vector<16x128xf32>
    %50 = arith.addf %49, %30 : vector<16x128xf32>
    %51 = arith.truncf %50 : vector<16x128xf32> to vector<16x128xbf16>
    %c8_47 = arith.constant 8 : index
    %c0_48 = arith.constant 0 : index
    %52 = vector.load %arg19[%c8_47, %c0_48] : memref<24x128xbf16, #tpu.memory_space<vmem>>, vector<16x128xbf16>
    tpu.vector_store %arg19[%c8_47, %c0_48], %51 {strides = array<i32>} : memref<24x128xbf16, #tpu.memory_space<vmem>>, vector<16x128xbf16>,
    %c6 = arith.constant 6 : index
    %c0_49 = arith.constant 0 : index
    %53 = vector.load %arg19[%c6, %c0_49] : memref<24x128xbf16, #tpu.memory_space<vmem>>, vector<16x128xbf16>
    %c0_50 = arith.constant 0 : index
    %c0_51 = arith.constant 0 : index
    %c0_52 = arith.constant 0 : index
    %54 = vector.load %arg8[%c0_50, %c0_51, %c0_52] : memref<2x128x128xbf16, #tpu.memory_space<vmem>>, vector<1x128x128xbf16>
    %55 = vector.shape_cast %54 : vector<1x128x128xbf16> to vector<128x128xbf16>
    %cst_53 = arith.constant dense<0.000000e+00> : vector<16x128xf32>
    %56 = tpu.matmul %53, %55, %cst_53 {dimension_numbers = #tpu.dot_dimension_numbers<[1], [0], [0], [1], [0, 0, 1, 1], [], []>} : vector<16x128xbf16>, vector<128x128xbf16>, vector<16x128xf32> -> vector<16x128xf32>
    %c8_54 = arith.constant 8 : index
    %c0_55 = arith.constant 0 : index
    %57 = vector.load %arg19[%c8_54, %c0_55] : memref<24x128xbf16, #tpu.memory_space<vmem>>, vector<16x128xbf16>
    %c1_56 = arith.constant 1 : index
    %c0_57 = arith.constant 0 : index
    %c0_58 = arith.constant 0 : index
    %58 = vector.load %arg8[%c1_56, %c0_57, %c0_58] : memref<2x128x128xbf16, #tpu.memory_space<vmem>>, vector<1x128x128xbf16>
    %59 = vector.shape_cast %58 : vector<1x128x128xbf16> to vector<128x128xbf16>
    %cst_59 = arith.constant dense<0.000000e+00> : vector<16x128xf32>
    %60 = tpu.matmul %57, %59, %cst_59 {dimension_numbers = #tpu.dot_dimension_numbers<[1], [0], [0], [1], [0, 0, 1, 1], [], []>} : vector<16x128xbf16>, vector<128x128xbf16>, vector<16x128xf32> -> vector<16x128xf32>
    %61 = arith.addf %56, %60 : vector<16x128xf32>
    %c0_60 = arith.constant 0 : index
    %c0_61 = arith.constant 0 : index
    %62 = vector.load %arg9[%c0_60, %c0_61] : memref<1x128xf32, #tpu.memory_space<vmem>>, vector<1x128xf32>
    %63 = vector.broadcast %62 : vector<1x128xf32> to vector<16x128xf32>
    %64 = arith.addf %61, %63 : vector<16x128xf32>
    %cst_62 = arith.constant 0.000000e+00 : f32
    %65 = vector.broadcast %cst_62 : f32 to vector<16x128xf32>
    %66 = arith.cmpf oge, %64, %65 : vector<16x128xf32>
    %cst_63 = arith.constant 0.00999999977 : f32
    %67 = vector.broadcast %cst_63 : f32 to vector<16x128xf32>
    %68 = arith.mulf %67, %64 : vector<16x128xf32>
    %69 = arith.select %66, %64, %68 : vector<16x128xi1>, vector<16x128xf32>
    %70 = arith.truncf %69 : vector<16x128xf32> to vector<16x128xbf16>
    %c8_64 = arith.constant 8 : index
    %c0_65 = arith.constant 0 : index
    %71 = vector.load %arg19[%c8_64, %c0_65] : memref<24x128xbf16, #tpu.memory_space<vmem>>, vector<16x128xbf16>
    tpu.vector_store %arg19[%c8_64, %c0_65], %70 {strides = array<i32>} : memref<24x128xbf16, #tpu.memory_space<vmem>>, vector<16x128xbf16>,
    %c6_66 = arith.constant 6 : index
    %c0_67 = arith.constant 0 : index
    %72 = vector.load %arg19[%c6_66, %c0_67] : memref<24x128xbf16, #tpu.memory_space<vmem>>, vector<16x128xbf16>
    %c0_68 = arith.constant 0 : index
    %c0_69 = arith.constant 0 : index
    %c0_70 = arith.constant 0 : index
    %73 = vector.load %arg10[%c0_68, %c0_69, %c0_70] : memref<2x128x128xbf16, #tpu.memory_space<vmem>>, vector<1x128x128xbf16>
    %74 = vector.shape_cast %73 : vector<1x128x128xbf16> to vector<128x128xbf16>
    %cst_71 = arith.constant dense<0.000000e+00> : vector<16x128xf32>
    %75 = tpu.matmul %72, %74, %cst_71 {dimension_numbers = #tpu.dot_dimension_numbers<[1], [0], [0], [1], [0, 0, 1, 1], [], []>} : vector<16x128xbf16>, vector<128x128xbf16>, vector<16x128xf32> -> vector<16x128xf32>
    %c8_72 = arith.constant 8 : index
    %c0_73 = arith.constant 0 : index
    %76 = vector.load %arg19[%c8_72, %c0_73] : memref<24x128xbf16, #tpu.memory_space<vmem>>, vector<16x128xbf16>
    %c1_74 = arith.constant 1 : index
    %c0_75 = arith.constant 0 : index
    %c0_76 = arith.constant 0 : index
    %77 = vector.load %arg10[%c1_74, %c0_75, %c0_76] : memref<2x128x128xbf16, #tpu.memory_space<vmem>>, vector<1x128x128xbf16>
    %78 = vector.shape_cast %77 : vector<1x128x128xbf16> to vector<128x128xbf16>
    %cst_77 = arith.constant dense<0.000000e+00> : vector<16x128xf32>
    %79 = tpu.matmul %76, %78, %cst_77 {dimension_numbers = #tpu.dot_dimension_numbers<[1], [0], [0], [1], [0, 0, 1, 1], [], []>} : vector<16x128xbf16>, vector<128x128xbf16>, vector<16x128xf32> -> vector<16x128xf32>
    %80 = arith.addf %75, %79 : vector<16x128xf32>
    %c0_78 = arith.constant 0 : index
    %c0_79 = arith.constant 0 : index
    %81 = vector.load %arg11[%c0_78, %c0_79] : memref<1x128xf32, #tpu.memory_space<vmem>>, vector<1x128xf32>
    %82 = vector.broadcast %81 : vector<1x128xf32> to vector<16x128xf32>
    %83 = arith.addf %80, %82 : vector<16x128xf32>
    %cst_80 = arith.constant 0.000000e+00 : f32
    %84 = vector.broadcast %cst_80 : f32 to vector<16x128xf32>
    %85 = arith.cmpf oge, %83, %84 : vector<16x128xf32>
    %cst_81 = arith.constant 0.00999999977 : f32
    %86 = vector.broadcast %cst_81 : f32 to vector<16x128xf32>
    %87 = arith.mulf %86, %83 : vector<16x128xf32>
    %88 = arith.select %85, %83, %87 : vector<16x128xi1>, vector<16x128xf32>
    %89 = arith.addf %88, %50 : vector<16x128xf32>
    %90 = arith.truncf %89 : vector<16x128xf32> to vector<16x128xbf16>
    %c8_82 = arith.constant 8 : index
    %c0_83 = arith.constant 0 : index
    %91 = vector.load %arg19[%c8_82, %c0_83] : memref<24x128xbf16, #tpu.memory_space<vmem>>, vector<16x128xbf16>
    tpu.vector_store %arg19[%c8_82, %c0_83], %90 {strides = array<i32>} : memref<24x128xbf16, #tpu.memory_space<vmem>>, vector<16x128xbf16>,
    %c4 = arith.constant 4 : index
    %c0_84 = arith.constant 0 : index
    %92 = vector.load %arg19[%c4, %c0_84] : memref<24x128xbf16, #tpu.memory_space<vmem>>, vector<16x128xbf16>
    %c0_85 = arith.constant 0 : index
    %c0_86 = arith.constant 0 : index
    %c0_87 = arith.constant 0 : index
    %93 = vector.load %arg12[%c0_85, %c0_86, %c0_87] : memref<2x128x128xbf16, #tpu.memory_space<vmem>>, vector<1x128x128xbf16>
    %94 = vector.shape_cast %93 : vector<1x128x128xbf16> to vector<128x128xbf16>
    %cst_88 = arith.constant dense<0.000000e+00> : vector<16x128xf32>
    %95 = tpu.matmul %92, %94, %cst_88 {dimension_numbers = #tpu.dot_dimension_numbers<[1], [0], [0], [1], [0, 0, 1, 1], [], []>} : vector<16x128xbf16>, vector<128x128xbf16>, vector<16x128xf32> -> vector<16x128xf32>
    %c8_89 = arith.constant 8 : index
    %c0_90 = arith.constant 0 : index
    %96 = vector.load %arg19[%c8_89, %c0_90] : memref<24x128xbf16, #tpu.memory_space<vmem>>, vector<16x128xbf16>
    %c1_91 = arith.constant 1 : index
    %c0_92 = arith.constant 0 : index
    %c0_93 = arith.constant 0 : index
    %97 = vector.load %arg12[%c1_91, %c0_92, %c0_93] : memref<2x128x128xbf16, #tpu.memory_space<vmem>>, vector<1x128x128xbf16>
    %98 = vector.shape_cast %97 : vector<1x128x128xbf16> to vector<128x128xbf16>
    %cst_94 = arith.constant dense<0.000000e+00> : vector<16x128xf32>
    %99 = tpu.matmul %96, %98, %cst_94 {dimension_numbers = #tpu.dot_dimension_numbers<[1], [0], [0], [1], [0, 0, 1, 1], [], []>} : vector<16x128xbf16>, vector<128x128xbf16>, vector<16x128xf32> -> vector<16x128xf32>
    %100 = arith.addf %95, %99 : vector<16x128xf32>
    %c0_95 = arith.constant 0 : index
    %c0_96 = arith.constant 0 : index
    %101 = vector.load %arg13[%c0_95, %c0_96] : memref<1x128xf32, #tpu.memory_space<vmem>>, vector<1x128xf32>
    %102 = vector.broadcast %101 : vector<1x128xf32> to vector<16x128xf32>
    %103 = arith.addf %100, %102 : vector<16x128xf32>
    %cst_97 = arith.constant 0.000000e+00 : f32
    %104 = vector.broadcast %cst_97 : f32 to vector<16x128xf32>
    %105 = arith.cmpf oge, %103, %104 : vector<16x128xf32>
    %cst_98 = arith.constant 0.00999999977 : f32
    %106 = vector.broadcast %cst_98 : f32 to vector<16x128xf32>
    %107 = arith.mulf %106, %103 : vector<16x128xf32>
    %108 = arith.select %105, %103, %107 : vector<16x128xi1>, vector<16x128xf32>
    %c8_99 = arith.constant 8 : index
    %c0_100 = arith.constant 0 : index
    %109 = vector.load %arg19[%c8_99, %c0_100] : memref<24x128xbf16, #tpu.memory_space<vmem>>, vector<16x128xbf16>
    %c0_101 = arith.constant 0 : index
    %c0_102 = arith.constant 0 : index
    %110 = vector.load %arg16[%c0_101, %c0_102] : memref<128x128xbf16, #tpu.memory_space<vmem>>, vector<128x128xbf16>
    %cst_103 = arith.constant dense<0.000000e+00> : vector<16x128xf32>
    %111 = tpu.matmul %109, %110, %cst_103 {dimension_numbers = #tpu.dot_dimension_numbers<[1], [0], [0], [1], [0, 0, 1, 1], [], []>} : vector<16x128xbf16>, vector<128x128xbf16>, vector<16x128xf32> -> vector<16x128xf32>
    %c0_104 = arith.constant 0 : index
    %c0_105 = arith.constant 0 : index
    %112 = vector.load %arg17[%c0_104, %c0_105] : memref<1x128xf32, #tpu.memory_space<vmem>>, vector<1x128xf32>
    %113 = vector.broadcast %112 : vector<1x128xf32> to vector<16x128xf32>
    %114 = arith.addf %111, %113 : vector<16x128xf32>
    %115 = arith.truncf %108 : vector<16x128xf32> to vector<16x128xbf16>
    %c8_106 = arith.constant 8 : index
    %c0_107 = arith.constant 0 : index
    %116 = vector.load %arg19[%c8_106, %c0_107] : memref<24x128xbf16, #tpu.memory_space<vmem>>, vector<16x128xbf16>
    tpu.vector_store %arg19[%c8_106, %c0_107], %115 {strides = array<i32>} : memref<24x128xbf16, #tpu.memory_space<vmem>>, vector<16x128xbf16>,
    %c4_108 = arith.constant 4 : index
    %c0_109 = arith.constant 0 : index
    %117 = vector.load %arg19[%c4_108, %c0_109] : memref<24x128xbf16, #tpu.memory_space<vmem>>, vector<16x128xbf16>
    %c0_110 = arith.constant 0 : index
    %c0_111 = arith.constant 0 : index
    %c0_112 = arith.constant 0 : index
    %118 = vector.load %arg14[%c0_110, %c0_111, %c0_112] : memref<2x128x128xbf16, #tpu.memory_space<vmem>>, vector<1x128x128xbf16>
    %119 = vector.shape_cast %118 : vector<1x128x128xbf16> to vector<128x128xbf16>
    %cst_113 = arith.constant dense<0.000000e+00> : vector<16x128xf32>
    %120 = tpu.matmul %117, %119, %cst_113 {dimension_numbers = #tpu.dot_dimension_numbers<[1], [0], [0], [1], [0, 0, 1, 1], [], []>} : vector<16x128xbf16>, vector<128x128xbf16>, vector<16x128xf32> -> vector<16x128xf32>
    %c8_114 = arith.constant 8 : index
    %c0_115 = arith.constant 0 : index
    %121 = vector.load %arg19[%c8_114, %c0_115] : memref<24x128xbf16, #tpu.memory_space<vmem>>, vector<16x128xbf16>
    %c1_116 = arith.constant 1 : index
    %c0_117 = arith.constant 0 : index
    %c0_118 = arith.constant 0 : index
    %122 = vector.load %arg14[%c1_116, %c0_117, %c0_118] : memref<2x128x128xbf16, #tpu.memory_space<vmem>>, vector<1x128x128xbf16>
    %123 = vector.shape_cast %122 : vector<1x128x128xbf16> to vector<128x128xbf16>
    %cst_119 = arith.constant dense<0.000000e+00> : vector<16x128xf32>
    %124 = tpu.matmul %121, %123, %cst_119 {dimension_numbers = #tpu.dot_dimension_numbers<[1], [0], [0], [1], [0, 0, 1, 1], [], []>} : vector<16x128xbf16>, vector<128x128xbf16>, vector<16x128xf32> -> vector<16x128xf32>
    %125 = arith.addf %120, %124 : vector<16x128xf32>
    %c0_120 = arith.constant 0 : index
    %c0_121 = arith.constant 0 : index
    %126 = vector.load %arg15[%c0_120, %c0_121] : memref<1x128xf32, #tpu.memory_space<vmem>>, vector<1x128xf32>
    %127 = vector.broadcast %126 : vector<1x128xf32> to vector<16x128xf32>
    %128 = arith.addf %125, %127 : vector<16x128xf32>
    %cst_122 = arith.constant 0.000000e+00 : f32
    %129 = vector.broadcast %cst_122 : f32 to vector<16x128xf32>
    %130 = arith.cmpf oge, %128, %129 : vector<16x128xf32>
    %cst_123 = arith.constant 0.00999999977 : f32
    %131 = vector.broadcast %cst_123 : f32 to vector<16x128xf32>
    %132 = arith.mulf %131, %128 : vector<16x128xf32>
    %133 = arith.select %130, %128, %132 : vector<16x128xi1>, vector<16x128xf32>
    %134 = arith.addf %133, %114 : vector<16x128xf32>
    %cst_124 = arith.constant dense<0xFF800000> : vector<128xf32>
    %135 = vector.multi_reduction <maximumf>, %134, %cst_124 [0] : vector<16x128xf32> to vector<128xf32>
    %136 = vector.shape_cast %135 : vector<128xf32> to vector<1x128xf32>
    %c0_125 = arith.constant 0 : index
    %c0_126 = arith.constant 0 : index
    %c0_127 = arith.constant 0 : index
    %137 = vector.load %arg18[%c0_125, %c0_126, %c0_127] : memref<1x1x128xf32, #tpu.memory_space<vmem>>, vector<1x1x128xf32>
    %138 = vector.shape_cast %137 : vector<1x1x128xf32> to vector<1x128xf32>
    %139 = vector.shape_cast %136 : vector<1x128xf32> to vector<1x1x128xf32>
    tpu.vector_store %arg18[%c0_125, %c0_126, %c0_127], %139 {strides = array<i32>} : memref<1x1x128xf32, #tpu.memory_space<vmem>>, vector<1x1x128xf32>,
    return
  }
  func.func @transform_0(%arg0: i32) -> (i32, i32, i32) {
    %c0_i32 = arith.constant 0 : i32
    %c0_i32_0 = arith.constant 0 : i32
    %c0_i32_1 = arith.constant 0 : i32
    return %arg0, %c0_i32, %c0_i32_0 : i32, i32, i32
  }
  func.func @transform_1(%arg0: i32) -> (i32, i32, i32) {
    %c0_i32 = arith.constant 0 : i32
    %c0_i32_0 = arith.constant 0 : i32
    %c0_i32_1 = arith.constant 0 : i32
    %c0_i32_2 = arith.constant 0 : i32
    return %c0_i32, %c0_i32_0, %c0_i32_1 : i32, i32, i32
  }
  func.func @transform_2(%arg0: i32) -> (i32, i32) {
    %c0_i32 = arith.constant 0 : i32
    %c0_i32_0 = arith.constant 0 : i32
    %c0_i32_1 = arith.constant 0 : i32
    return %c0_i32, %c0_i32_0 : i32, i32
  }
  func.func @transform_3(%arg0: i32) -> (i32, i32, i32) {
    %c0_i32 = arith.constant 0 : i32
    %c0_i32_0 = arith.constant 0 : i32
    %c0_i32_1 = arith.constant 0 : i32
    %c0_i32_2 = arith.constant 0 : i32
    return %c0_i32, %c0_i32_0, %c0_i32_1 : i32, i32, i32
  }
  func.func @transform_4(%arg0: i32) -> (i32, i32) {
    %c0_i32 = arith.constant 0 : i32
    %c0_i32_0 = arith.constant 0 : i32
    %c0_i32_1 = arith.constant 0 : i32
    return %c0_i32, %c0_i32_0 : i32, i32
  }
  func.func @transform_5(%arg0: i32) -> (i32, i32) {
    %c0_i32 = arith.constant 0 : i32
    %c0_i32_0 = arith.constant 0 : i32
    %c0_i32_1 = arith.constant 0 : i32
    return %c0_i32, %c0_i32_0 : i32, i32
  }
  func.func @transform_6(%arg0: i32) -> (i32, i32) {
    %c0_i32 = arith.constant 0 : i32
    %c0_i32_0 = arith.constant 0 : i32
    %c0_i32_1 = arith.constant 0 : i32
    return %c0_i32, %c0_i32_0 : i32, i32
  }
  func.func @transform_7(%arg0: i32) -> (i32, i32, i32) {
    %c0_i32 = arith.constant 0 : i32
    %c0_i32_0 = arith.constant 0 : i32
    %c0_i32_1 = arith.constant 0 : i32
    %c0_i32_2 = arith.constant 0 : i32
    return %c0_i32, %c0_i32_0, %c0_i32_1 : i32, i32, i32
  }
  func.func @transform_8(%arg0: i32) -> (i32, i32) {
    %c0_i32 = arith.constant 0 : i32
    %c0_i32_0 = arith.constant 0 : i32
    %c0_i32_1 = arith.constant 0 : i32
    return %c0_i32, %c0_i32_0 : i32, i32
  }
  func.func @transform_9(%arg0: i32) -> (i32, i32, i32) {
    %c0_i32 = arith.constant 0 : i32
    %c0_i32_0 = arith.constant 0 : i32
    %c0_i32_1 = arith.constant 0 : i32
    %c0_i32_2 = arith.constant 0 : i32
    return %c0_i32, %c0_i32_0, %c0_i32_1 : i32, i32, i32
  }
  func.func @transform_10(%arg0: i32) -> (i32, i32) {
    %c0_i32 = arith.constant 0 : i32
    %c0_i32_0 = arith.constant 0 : i32
    %c0_i32_1 = arith.constant 0 : i32
    return %c0_i32, %c0_i32_0 : i32, i32
  }
  func.func @transform_11(%arg0: i32) -> (i32, i32, i32) {
    %c0_i32 = arith.constant 0 : i32
    %c0_i32_0 = arith.constant 0 : i32
    %c0_i32_1 = arith.constant 0 : i32
    %c0_i32_2 = arith.constant 0 : i32
    return %c0_i32, %c0_i32_0, %c0_i32_1 : i32, i32, i32
  }
  func.func @transform_12(%arg0: i32) -> (i32, i32) {
    %c0_i32 = arith.constant 0 : i32
    %c0_i32_0 = arith.constant 0 : i32
    %c0_i32_1 = arith.constant 0 : i32
    return %c0_i32, %c0_i32_0 : i32, i32
  }
  func.func @transform_13(%arg0: i32) -> (i32, i32, i32) {
    %c0_i32 = arith.constant 0 : i32
    %c0_i32_0 = arith.constant 0 : i32
    %c0_i32_1 = arith.constant 0 : i32
    %c0_i32_2 = arith.constant 0 : i32
    return %c0_i32, %c0_i32_0, %c0_i32_1 : i32, i32, i32
  }
  func.func @transform_14(%arg0: i32) -> (i32, i32) {
    %c0_i32 = arith.constant 0 : i32
    %c0_i32_0 = arith.constant 0 : i32
    %c0_i32_1 = arith.constant 0 : i32
    return %c0_i32, %c0_i32_0 : i32, i32
  }
  func.func @transform_15(%arg0: i32) -> (i32, i32) {
    %c0_i32 = arith.constant 0 : i32
    %c0_i32_0 = arith.constant 0 : i32
    %c0_i32_1 = arith.constant 0 : i32
    return %c0_i32, %c0_i32_0 : i32, i32
  }
  func.func @transform_16(%arg0: i32) -> (i32, i32) {
    %c0_i32 = arith.constant 0 : i32
    %c0_i32_0 = arith.constant 0 : i32
    %c0_i32_1 = arith.constant 0 : i32
    return %c0_i32, %c0_i32_0 : i32, i32
  }
  func.func @transform_17(%arg0: i32) -> (i32, i32, i32) {
    %c0_i32 = arith.constant 0 : i32
    %c0_i32_0 = arith.constant 0 : i32
    %c0_i32_1 = arith.constant 0 : i32
    return %arg0, %c0_i32, %c0_i32_0 : i32, i32, i32
  }
}

</mosaic_0001>

<bundles_post_ra>
// kernel: tpu_custom_call.1
= control target key start
LH: loop header
LB: loop body
LE: loop exit
PB: predicated region body
PF: predicated region fallthrough
CT: control target
= control target key end

     0   :  { %s4317_s0 = inlined_call_operand.vmem [shape: f32[2,16,4], index: 0, kind: input, shape index: {}]   ;;  %s4318_s1 = inlined_call_operand.hbm [shape: bf16[2,128,128], index: 1, kind: input, shape index: {}]   ;;  %s4319_s2 = inlined_call_operand.vmem [shape: f32[1,128], index: 2, kind: input, shape index: {}]   ;;  %s4320_s3 = inlined_call_operand.hbm [shape: bf16[2,128,128], index: 3, kind: input, shape index: {}]   ;;  %s4321_s4 = inlined_call_operand.vmem [shape: f32[1,128], index: 4, kind: input, shape index: {}]   ;;  %s4322_s5 = inlined_call_operand.hbm [shape: bf16[128,128], index: 5, kind: input, shape index: {}]   ;;  %s4323_s6 = inlined_call_operand.vmem [shape: f32[1,128], index: 6, kind: input, shape index: {}]   ;;  %s4324_s7 = inlined_call_operand.hbm [shape: bf16[2,128,128], index: 7, kind: input, shape index: {}]   ;;  %s4325_s8 = inlined_call_operand.vmem [shape: f32[1,128], index: 8, kind: input, shape index: {}]   ;;  %s4326_s9 = inlined_call_operand.hbm [shape: bf16[2,128,128], index: 9, kind: input, shape index: {}]   ;;  %s4327_s10 = inlined_call_operand.vmem [shape: f32[1,128], index: 10, kind: input, shape index: {}]   ;;  %s4328_s11 = inlined_call_operand.hbm [shape: bf16[2,128,128], index: 11, kind: input, shape index: {}]   ;;  %s4329_s12 = inlined_call_operand.vmem [shape: f32[1,128], index: 12, kind: input, shape index: {}]   ;;  %s4330_s13 = inlined_call_operand.hbm [shape: bf16[2,128,128], index: 13, kind: input, shape index: {}]   ;;  %s4331_s14 = inlined_call_operand.vmem [shape: f32[1,128], index: 14, kind: input, shape index: {}]   ;;  %s4332_s15 = inlined_call_operand.vmem [shape: bf16[128,128], index: 15, kind: input, shape index: {}]   ;;  %s4333_s16 = inlined_call_operand.vmem [shape: f32[1,128], index: 16, kind: input, shape index: {}]   ;;  %s4334_s17 = inlined_call_operand.hbm [shape: f32[2,1,128], index: 17, kind: output, shape index: {}]  }
   0x1   :  { %4349 = sst [smem:[#allocation29_spill]] %s4317_s0 }
   0x2   :  { %4350 = sst [smem:[#allocation30_spill]] %s4318_s1 }
   0x3   :  { %4351 = sst [smem:[#allocation31_spill]] %s4320_s3 }
   0x4   :  { %4352 = sst [smem:[#allocation32_spill]] %s4324_s7 }
   0x5   :  { %4353 = sst [smem:[#allocation33_spill]] %s4331_s14 }
   0x6   :  { %4354 = sst [smem:[#allocation34_spill]] %s4333_s16 }
   0x7   :  { %4355 = sst [smem:[#allocation35_spill]] %s4334_s17 }
   0x8   :  { %22 = vsyncpa [#allocation4], 0 }
   0x9   :  { %23 = vsyncpa [#allocation7], 0 }
   0xa   :  { %24 = vsyncpa [#allocation10], 0 }
   0xb   :  { %25 = vsyncpa [#allocation13], 0 }
   0xc   :  { %26 = vsyncpa [#allocation5], 0 }
   0xd   :  { %28 = vsyncpa [#allocation5 + $0x1], 0  ;;  %s3806_s24 = smov 0   ;;  %s3808_s25 = smov 0  }
   0xe   :  { %s3810_s26 = smov 0   ;;  %s3812_s27 = smov 0  }
   0xf LB: > { %4356 = sst [smem:[#allocation21_spill]] %s3689_s24  ;;  %s3827_s28 = sadd.s32 4294967295, %s3701_s27   ;;  %s3701_s27 = sphi %s3812_s27, %s4393_s27   ;;  %s3697_s26 = sphi %s3810_s26, %s4396_s26   ;;  %s3693_s25 = sphi %s3808_s25, %s4395_s25   ;;  %s3689_s24 = sphi %s3806_s24, %s4394_s24  }
  0x10   : > { %4357 = sst [smem:[#allocation22_spill]] %s3693_s25  ;;  %s2591_s29 = sadd.s32 4294967294, %s3701_s27  }
  0x11   : > { %4358 = sst [smem:[#allocation23_spill]] %s3697_s26  ;;  %s3831_s0 = sadd.s32 1, %s3701_s27  }
  0x12   : > { %4359 = sst [smem:[#allocation24_spill]] %s3701_s27  ;;  %s403_s30 = sadd.s32 1, %s3697_s26 }
  0x13   : > { %4360 = sst [smem:[#allocation25_spill]] %s3831_s0  ;;  %s400_s18 = ssub.s32 %s3701_s27, %s3831_s0 }
  0x14   : > { %p413_p0 = scmp.ne.s32.totalorder %s3697_s26, %s3693_s25  ;;  %p401_p1 = scmp.eq.s32.totalorder %s400_s18, 0 }
  0x15   : > { %p414_p2 = scmp.eq.s32.totalorder %s3827_s28, 1  ;;  %p419_p3 = scmp.ne.s32.totalorder %s3693_s25, %s3689_s24 }
  0x16   : > { %p420_p4 = scmp.eq.s32.totalorder %s2591_s29, 1  ;;  %p2592_p7 = scmp.ge.s32.totalorder %s3701_s27, 1 }
  0x17   : > { %s3842_s19 = scalar_select %p401_p1, %s3697_s26, %s403_s30  }
  0x18   : > { %p3844_p5 = por %p414_p2, %p413_p0  ;;  %p3848_p6 = por %p420_p4, %p419_p3 }
  0x19   : > { %4361 = sst [smem:[#allocation26_spill]] %s3842_s19  ;;  %p427_p8 = scmp.lt.s32.totalorder %s3701_s27, 3 }
  0x1a   : > { %s4362_s1 = scalar_select %p3844_p5, 1, 0 }
  0x1b   : > { %s4364_s20 = scalar_select %p3848_p6, 1, 0 }
  0x1c   : > { %4363 = sst [smem:[#allocation27_spill]] %s4362_s1  ;;  %p4343_p9 = scmp.eq.s32.totalorder %s3827_s28, 0 }
  0x1d   : > { %4365 = sst [smem:[#allocation28_spill]] %s4364_s20  ;;  %p3855_p10 = pnand %p2592_p7, %p427_p8 }
  0x1e   : > { %s3703_s22 = smov [#allocation6]   ;;  %s3704_s30 = smov [#allocation9]  }
  0x1f   : > { %s4366_s21 = scalar_select %p3855_p10, 1, 0 }
  0x20   : > { %p3213_p11 = pneg %p3855_p10  ;;  %s455_s23 = sshll.u32 %s3703_s22, 4  ;;  %s3861_s23 = int_to_ptr.vmem [resolvable:$true] %s455_s23 }
  0x21   : > { %s487_s18 = sshll.u32 %s3704_s30, 4  ;;  %s3705_s19 = smov [#allocation12]   ;;  %s3869_s18 = int_to_ptr.vmem [resolvable:$true] %s487_s18 }
  0x22   : > { %p3865_p12 = pnand %p4343_p9, %p3213_p11  ;;  %s3871_s26 = sshll.u32 %s3705_s19, 4  ;;  %s520_s26 = int_to_ptr.vmem [resolvable:$true] %s3871_s26 }
  0x23   : > { %s4368_s3 = sld [smem:[#allocation31_spill]] }
  0x24   : > { %p3881_p0 = pneg %p3865_p12 }
  0x29   : > { %s3427_s24 = scalar_lea.hbm %s4368_s3, 2048 }
  0x2a   : > { %p3428_p13 = scmp.ne.s32.totalorder %s4368_s3, %s3427_s24  ;;  %p3434_p3 = scmp.lt.u32.totalorder %s3427_s24, %s4368_s3 }
  0x2c   : > { %p3430_p1 = pnand %p3881_p0, %p3428_p13 }
  0x2e   : > { %p3431_p2 = pneg %p3430_p1 }
  0x30   : > { %p3436_p4 = pnand %p3434_p3, %p3431_p2 }
  0x32   : > { %3439 = shalt.err (!%p3436_p4)
}
  0x33   : > { %s3440_s27 = scalar_lea.vmem %s3861_s23, 2048  ;;  %p3448_p9 = scmp.lt.s32.totalorder %s3861_s23, %s3861_s23 }
  0x34   : > { %p3441_p7 = scmp.ne.s32.totalorder %s3861_s23, %s3440_s27  ;;  %p3449_p6 = scmp.lt.s32.totalorder %s3440_s27, %s3440_s27 }
  0x36   : > { %p3443_p8 = pnand %p3441_p7, %p3881_p0  ;;  %p3450_p13 = por %p3449_p6, %p3448_p9 }
  0x38   : > { %p3444_p11 = pneg %p3443_p8 }
  0x3a   : > { %p3451_p1 = pnand %p3450_p13, %p3444_p11 }
  0x3c   : > { %3454 = shalt.err (!%p3451_p1)
}
  0x3d   : > { %s3706_s0 = smov 64   ;;  %s3707_s24 = smov 4  }
  0x3e   : > { %3219 = dma.hbm_to_vmem [thread:$0]  (!%p3865_p12), %s4368_s3, 2048, %s3861_s23, [#allocation7], %s3706_s0, %s3706_s0, %s3707_s24  }
  0x3f   : > { %s4370_s7 = sld [smem:[#allocation32_spill]] }
  0x45   : > { %s3455_s27 = scalar_lea.hbm %s4370_s7, 2048 }
  0x46   : > { %p3456_p6 = scmp.ne.s32.totalorder %s4370_s7, %s3455_s27  ;;  %p3462_p3 = scmp.lt.u32.totalorder %s3455_s27, %s4370_s7 }
  0x48   : > { %p3458_p9 = pnand %p3456_p6, %p3881_p0 }
  0x4a   : > { %p3459_p2 = pneg %p3458_p9 }
  0x4c   : > { %p3464_p4 = pnand %p3462_p3, %p3459_p2 }
  0x4e   : > { %3467 = shalt.err (!%p3464_p4)
}
  0x4f   : > { %s3468_s23 = scalar_lea.vmem %s3869_s18, 2048  ;;  %p3476_p13 = scmp.lt.s32.totalorder %s3869_s18, %s3869_s18 }
  0x50   : > { %p3469_p7 = scmp.ne.s32.totalorder %s3869_s18, %s3468_s23  ;;  %p3477_p1 = scmp.lt.s32.totalorder %s3468_s23, %s3468_s23 }
  0x52   : > { %p3471_p8 = pnand %p3469_p7, %p3881_p0  ;;  %p3478_p6 = por %p3477_p1, %p3476_p13 }
  0x54   : > { %p3472_p11 = pneg %p3471_p8 }
  0x56   : > { %p3479_p9 = pnand %p3478_p6, %p3472_p11 }
  0x58   : > { %3482 = shalt.err (!%p3479_p9)
}
  0x59   : > { %3225 = dma.hbm_to_vmem [thread:$0]  (!%p3865_p12), %s4370_s7, 2048, %s3869_s18, [#allocation10], %s3706_s0, %s3706_s0, %s3707_s24  }
  0x5a   : > { %s3483_s20 = scalar_lea.hbm %s4328_s11, 2048 }
  0x5b   : > { %p3484_p2 = scmp.ne.s32.totalorder %s4328_s11, %s3483_s20  ;;  %p3490_p7 = scmp.lt.u32.totalorder %s3483_s20, %s4328_s11 }
  0x5d   : > { %p3486_p3 = pnand %p3484_p2, %p3881_p0 }
  0x5f   : > { %p3487_p4 = pneg %p3486_p3 }
  0x61   : > { %p3492_p8 = pnand %p3490_p7, %p3487_p4 }
  0x63   : > { %3495 = shalt.err (!%p3492_p8)
}
  0x64   : > { %s3496_s23 = scalar_lea.vmem %s520_s26, 2048  ;;  %p3504_p6 = scmp.lt.s32.totalorder %s520_s26, %s520_s26 }
  0x65   : > { %p3497_p11 = scmp.ne.s32.totalorder %s520_s26, %s3496_s23  ;;  %p3505_p9 = scmp.lt.s32.totalorder %s3496_s23, %s3496_s23 }
  0x67   : > { %p3499_p13 = pnand %p3497_p11, %p3881_p0  ;;  %p3506_p5 = por %p3505_p9, %p3504_p6 }
  0x69   : > { %p3500_p1 = pneg %p3499_p13 }
  0x6b   : > { %p3507_p10 = pnand %p3506_p5, %p3500_p1 }
  0x6d   : > { %3510 = shalt.err (!%p3507_p10)
}
  0x6e   : > { %3231 = dma.hbm_to_vmem [thread:$0]  (!%p3865_p12), %s4328_s11, 2048, %s520_s26, [#allocation13], %s3706_s0, %s3706_s0, %s3707_s24  }
  0x6f   : > { %s3708_s16 = smov [#allocation3]   ;;  %s3709_s1 = smov [#allocation8]  }
  0x70   : > { %s439_s25 = sshll.u32 %s3708_s16, 4  ;;  %s471_s20 = sshll.u32 %s3709_s1, 4  ;;  %s440_s25 = int_to_ptr.vmem [resolvable:$true] %s439_s25  ;;  %s472_s20 = int_to_ptr.vmem [resolvable:$true] %s471_s20 }
  0x71   : > { %s4371_s19 = sld [smem:[#allocation30_spill]] }
  0x77   : > { %s3511_s27 = scalar_lea.hbm %s4371_s19, 2048 }
  0x78   : > { %p3512_p5 = scmp.ne.s32.totalorder %s4371_s19, %s3511_s27  ;;  %p3518_p3 = scmp.lt.u32.totalorder %s3511_s27, %s4371_s19 }
  0x7a   : > { %p3514_p10 = pnand %p3512_p5, %p3881_p0 }
  0x7c   : > { %p3515_p2 = pneg %p3514_p10 }
  0x7e   : > { %p3520_p4 = pnand %p3518_p3, %p3515_p2 }
  0x80   : > { %3523 = shalt.err (!%p3520_p4)
}
  0x81   : > { %s3524_s26 = scalar_lea.vmem %s440_s25, 2048  ;;  %p3532_p13 = scmp.lt.s32.totalorder %s440_s25, %s440_s25 }
  0x82   : > { %p3525_p7 = scmp.ne.s32.totalorder %s440_s25, %s3524_s26  ;;  %p3533_p1 = scmp.lt.s32.totalorder %s3524_s26, %s3524_s26 }
  0x84   : > { %p3527_p8 = pnand %p3525_p7, %p3881_p0  ;;  %p3534_p6 = por %p3533_p1, %p3532_p13 }
  0x86   : > { %p3528_p11 = pneg %p3527_p8 }
  0x88   : > { %p3535_p9 = pnand %p3534_p6, %p3528_p11 }
  0x8a   : > { %3538 = shalt.err (!%p3535_p9)
}
  0x8b   : > { %3216 = dma.hbm_to_vmem [thread:$0]  (!%p3865_p12), %s4371_s19, 2048, %s440_s25, [#allocation4], %s3706_s0, %s3706_s0, %s3707_s24  }
  0x8c   : > { %s3539_s1 = scalar_lea.hbm %s4322_s5, 1024 }
  0x8d   : > { %p3540_p5 = scmp.ne.s32.totalorder %s4322_s5, %s3539_s1  ;;  %p3546_p3 = scmp.lt.u32.totalorder %s3539_s1, %s4322_s5 }
  0x8f   : > { %p3542_p10 = pnand %p3540_p5, %p3881_p0 }
  0x91   : > { %p3543_p2 = pneg %p3542_p10 }
  0x93   : > { %p3548_p4 = pnand %p3546_p3, %p3543_p2 }
  0x95   : > { %3551 = shalt.err (!%p3548_p4)
}
  0x96   : > { %s3552_s18 = scalar_lea.vmem %s472_s20, 1024  ;;  %p3560_p13 = scmp.lt.s32.totalorder %s472_s20, %s472_s20 }
  0x97   : > { %p3553_p7 = scmp.ne.s32.totalorder %s472_s20, %s3552_s18  ;;  %p3561_p1 = scmp.lt.s32.totalorder %s3552_s18, %s3552_s18 }
  0x99   : > { %p3555_p8 = pnand %p3553_p7, %p3881_p0  ;;  %p3562_p6 = por %p3561_p1, %p3560_p13 }
  0x9b   : > { %p3556_p11 = pneg %p3555_p8 }
  0x9d   : > { %p3563_p9 = pnand %p3562_p6, %p3556_p11 }
  0x9f   : > { %3566 = shalt.err (!%p3563_p9)
}
  0xa0   : > { %3222 = dma.hbm_to_vmem [thread:$0]  (!%p3865_p12), %s4322_s5, 1024, %s472_s20, [#allocation7], %s3706_s0, %s3706_s0, %s3707_s24  }
  0xa1   : > { %s3710_s3 = smov [#allocation11]   ;;  %s3711_s14 = smov [#allocation14]  }
  0xa2   : > { %s503_s7 = sshll.u32 %s3710_s3, 4  ;;  %s535_s16 = sshll.u32 %s3711_s14, 4  ;;  %s504_s7 = int_to_ptr.vmem [resolvable:$true] %s503_s7  ;;  %s536_s16 = int_to_ptr.vmem [resolvable:$true] %s535_s16 }
  0xa3   : > { %s3567_s30 = scalar_lea.hbm %s4326_s9, 2048 }
  0xa4   : > { %p3568_p5 = scmp.ne.s32.totalorder %s4326_s9, %s3567_s30  ;;  %p3574_p3 = scmp.lt.u32.totalorder %s3567_s30, %s4326_s9 }
  0xa6   : > { %p3570_p10 = pnand %p3568_p5, %p3881_p0 }
  0xa8   : > { %p3571_p2 = pneg %p3570_p10 }
  0xaa   : > { %p3576_p4 = pnand %p3574_p3, %p3571_p2 }
  0xac   : > { %3579 = shalt.err (!%p3576_p4)
}
  0xad   : > { %s3580_s20 = scalar_lea.vmem %s504_s7, 2048  ;;  %p3588_p13 = scmp.lt.s32.totalorder %s504_s7, %s504_s7 }
  0xae   : > { %p3581_p7 = scmp.ne.s32.totalorder %s504_s7, %s3580_s20  ;;  %p3589_p1 = scmp.lt.s32.totalorder %s3580_s20, %s3580_s20 }
  0xb0   : > { %p3583_p8 = pnand %p3581_p7, %p3881_p0  ;;  %p3590_p6 = por %p3589_p1, %p3588_p13 }
  0xb2   : > { %p3584_p11 = pneg %p3583_p8 }
  0xb4   : > { %p3591_p9 = pnand %p3590_p6, %p3584_p11 }
  0xb6   : > { %3594 = shalt.err (!%p3591_p9)
}
  0xb7   : > { %3228 = dma.hbm_to_vmem [thread:$0]  (!%p3865_p12), %s4326_s9, 2048, %s504_s7, [#allocation10], %s3706_s0, %s3706_s0, %s3707_s24  }
  0xb8   : > { %s3595_s22 = scalar_lea.hbm %s4330_s13, 2048 }
  0xb9   : > { %p3596_p5 = scmp.ne.s32.totalorder %s4330_s13, %s3595_s22  ;;  %p3602_p3 = scmp.lt.u32.totalorder %s3595_s22, %s4330_s13 }
  0xbb   : > { %p3598_p10 = pnand %p3596_p5, %p3881_p0 }
  0xbd   : > { %p3599_p2 = pneg %p3598_p10 }
  0xbf   : > { %p3604_p4 = pnand %p3602_p3, %p3599_p2 }
  0xc1   : > { %3607 = shalt.err (!%p3604_p4)
}
  0xc2   : > { %s3608_s25 = scalar_lea.vmem %s536_s16, 2048  ;;  %p3616_p13 = scmp.lt.s32.totalorder %s536_s16, %s536_s16 }
  0xc3   : > { %p3609_p7 = scmp.ne.s32.totalorder %s536_s16, %s3608_s25  ;;  %p3617_p1 = scmp.lt.s32.totalorder %s3608_s25, %s3608_s25 }
  0xc5   : > { %p3611_p8 = pnand %p3609_p7, %p3881_p0  ;;  %p3618_p6 = por %p3617_p1, %p3616_p13 }
  0xc7   : > { %p3612_p11 = pneg %p3611_p8 }
  0xc9   : > { %p3619_p9 = pnand %p3618_p6, %p3612_p11 }
  0xcb   : > { %3622 = shalt.err (!%p3619_p9)
}
  0xcc   : > { %3234 = dma.hbm_to_vmem [thread:$0]  (!%p3865_p12), %s4330_s13, 2048, %s536_s16, [#allocation13], %s3706_s0, %s3706_s0, %s3707_s24  }
  0xcd   : > { %p4372_p5 = scmp.ne.s32.totalorder %s4366_s21, 0 }
  0xce   : > { %p4373_p0 = scmp.eq.s32.totalorder (!%p4372_p5), %s3827_s28, 0 }
  0xcf   : > { %568 = sbr.rel (%p4372_p5) target bundleno = 1693 (0x69d), region = 88 }
  0xd6   : > { %3668 = dma.done.wait (%p4373_p0), [#allocation4], 2048   ;;  %p4374_p10 = pmov %p4373_p0 }
  0xd7   : > { %p4375_p2 = pmov %p4373_p0 }
  0xd8   : > { %3670 = vsyncadd (%p4374_p10), [#allocation4], 4294965248 }
  0xd9   : > { %3672 = dma.done.wait (%p4375_p2), [#allocation7], 3072   ;;  %p4376_p3 = pmov %p4373_p0 }
  0xda   : > { %p4377_p4 = pmov %p4373_p0 }
  0xdb   : > { %3674 = vsyncadd (%p4376_p3), [#allocation7], 4294964224 }
  0xdc   : > { %3676 = dma.done.wait (%p4377_p4), [#allocation10], 4096   ;;  %p4378_p12 = pmov %p4373_p0 }
  0xdd   : > { %p4379_p7 = pmov %p4373_p0 }
  0xde   : > { %3678 = vsyncadd (%p4378_p12), [#allocation10], 4294963200 }
  0xdf   : > { %3680 = dma.done.wait (%p4379_p7), [#allocation13], 4096   ;;  %p4380_p8 = pmov %p4373_p0 }
  0xe0   : > { %v3712_v0 = vmov 0.0   ;;  %v3713_v1 = vmov 0   ;;  %vm3714_vm0 = vmmov 0   ;;  %v3298_v2 = vld [vmem:[#allocation3 + $0x40] sm:$0xff]   ;;  %v3300_v4 = vld [vmem:[#allocation3 + $0x48] sm:$0xff]   ;;  %p643_p11 = scmp.lt.s32.totalorder %s3827_s28, 1 }
  0xe1   : > { %3682 = vsyncadd (%p4380_p8), [#allocation13], 4294963200  ;;  %2903 = vmatprep.subr.bf16.mxu0 %v3712_v0  ;;  %2923 = vmatprep.subr.bf16.mxu1 %v3712_v0  ;;  %650 = vst [vmem:[#allocation2 + $0x4] sm:$0xf] %v3713_v1  ;;  %v3299_v3 = vld [vmem:[#allocation3] sm:$0xff]   ;;  %v3301_v5 = vld [vmem:[#allocation3 + $0x8] sm:$0xff]  }
  0xe2   : > { %651 = vst [vmem:[#allocation2 + $0x8] sm:$0xf] %v3713_v1  ;;  %649 = vst [vmem:[#allocation2] sm:$0xf] %v3713_v1  ;;  %2919 = vmatprep.mubr.msk.bf16.mxu0 %vm3714_vm0, %v3712_v0  ;;  %2939 = vmatprep.mubr.msk.bf16.mxu1 %vm3714_vm0, %v3712_v0  ;;  %v3302_v6 = vld [vmem:[#allocation3 + $0x50] sm:$0xff]   ;;  %s644_s17 = scalar_select %p643_p11, %s3827_s28, 1 }
  0xe3   : > { %2904 = vmatpush3.bf16.msra.mxu0 %v3298_v2  ;;  %2924 = vmatpush3.bf16.msra.mxu1 %v3299_v3  ;;  %v3303_v7 = vld [vmem:[#allocation3 + $0x10] sm:$0xff]   ;;  %v3304_v8 = vld [vmem:[#allocation3 + $0x58] sm:$0xff]   ;;  %s4381_s24 = sld [smem:[#allocation29_spill]]  ;;  %v3306_v10 = vld [vmem:[#allocation3 + $0x60] sm:$0xff]   ;;  %vm662_vm1 = vcmask 27648   ;;  %vm1452_vm7 = vcmask 1044480  }
  0xe4   : > { %2905 = vmatprep.subr.bf16.mxu0 %v3712_v0  ;;  %2925 = vmatprep.subr.bf16.mxu1 %v3712_v0  ;;  %s2764_s21 = sshll.u32 %s644_s17, 4  ;;  %v3305_v9 = vld [vmem:[#allocation3 + $0x18] sm:$0xff]   ;;  %v3307_v11 = vld [vmem:[#allocation3 + $0x20] sm:$0xff]   ;;  %v3308_v16 = vld [vmem:[#allocation3 + $0x68] sm:$0xff]   ;;  %vm800_vm2 = vsmask.f32 4352 }
  0xe5   : > { %v3309_v17 = vld [vmem:[#allocation3 + $0x28] sm:$0xff]   ;;  %v3310_v18 = vld [vmem:[#allocation3 + $0x70] sm:$0xff]   ;;  %v3312_v21 = vld [vmem:[#allocation3 + $0x78] sm:$0xff]   ;;  %vm1967_vm12 = vcmask 1045504   ;;  %s4382_s17 = sld [smem:[#allocation33_spill]]  ;;  %s4383_s0 = sld [smem:[#allocation34_spill]] }
  0xe6   : > { %v3311_v19 = vld [vmem:[#allocation3 + $0x30] sm:$0xff]   ;;  %v3313_v24 = vld [vmem:[#allocation3 + $0x38] sm:$0xff]   ;;  %v3316_v32 = vld [vmem:[#allocation8] sm:$0xff]   ;;  %s2761_s3 = sshll.u32 %s3827_s28, 4  ;;  %s4386_s27 = sld [smem:[#allocation35_spill]] }
  0xe7   : > { %2906 = vmatpush3.bf16.msra.mxu0 %v3300_v4  ;;  %2926 = vmatpush3.bf16.msra.mxu1 %v3301_v5  ;;  %v3323_v37 = vld [vmem:[#allocation6 + $0x40] sm:$0xff]   ;;  %v3317_v38 = vld [vmem:[#allocation8 + $0x8] sm:$0xff]   ;;  %v3318_v43 = vld [vmem:[#allocation8 + $0x10] sm:$0xff]   ;;  %s3715_s28 = smov [#allocation15]  }
  0xe8   : > { %2907 = vmatprep.subr.bf16.mxu0 %v3712_v0  ;;  %2927 = vmatprep.subr.bf16.mxu1 %v3712_v0  ;;  %v3325_v42 = vld [vmem:[#allocation6 + $0x48] sm:$0xff]   ;;  %v3327_v44 = vld [vmem:[#allocation6 + $0x50] sm:$0xff]   ;;  %v3319_v45 = vld [vmem:[#allocation8 + $0x18] sm:$0xff]   ;;  %s3627_s20 = sshll.u32 %s3715_s28, 4  ;;  %s3628_s20 = int_to_ptr.vmem [resolvable:$false] %s3627_s20 }
  0xe9   : > { %s647_s16 = scalar_lea.vmem %s4381_s24, %s2764_s21  ;;  %v665_v20 = vld [vmem:[#allocation2] sm:$0x8]  ;;  %v3320_v46 = vld [vmem:[#allocation8 + $0x20] sm:$0xff]   ;;  %v3321_v47 = vld [vmem:[#allocation8 + $0x28] sm:$0xff]   ;;  %s4384_s24 = sld [smem:[#allocation22_spill]] }
  0xea   : > { %v652_v12 = vld [vmem:[%s647_s16] sm:$0xff]  ;;  %v653_v13 = vld [vmem:[%s647_s16 + $0x8] sm:$0xff]  ;;  %v3328_v51 = vld [vmem:[#allocation6 + $0x8] sm:$0xff]   ;;  %s4385_s16 = sld [smem:[#allocation27_spill]] }
  0xeb   : > { %2908 = vmatpush3.bf16.msra.mxu0 %v3302_v6  ;;  %2928 = vmatpush3.bf16.msra.mxu1 %v3303_v7  ;;  %v2765_v14 = vpack.c.bf16 %v652_v12, %v652_v12  ;;  %v2766_v15 = vpack.c.bf16 %v653_v13, %v653_v13  ;;  %v3322_v48 = vld [vmem:[#allocation8 + $0x30] sm:$0xff]   ;;  %v3324_v49 = vld [vmem:[#allocation8 + $0x38] sm:$0xff]   ;;  %v3326_v50 = vld [vmem:[#allocation6] sm:$0xff]  }
  0xec   : > { %2909 = vmatprep.subr.bf16.mxu0 %v3712_v0  ;;  %2929 = vmatprep.subr.bf16.mxu1 %v3712_v0  ;;  %v3329_v52 = vld [vmem:[#allocation6 + $0x58] sm:$0xff]   ;;  %v3330_v53 = vld [vmem:[#allocation6 + $0x10] sm:$0xff]   ;;  %v3331_v54 = vld [vmem:[#allocation6 + $0x60] sm:$0xff]   ;;  %s4387_s23 = smov %s4386_s27  ;;  %s4275_s18 = scalar_lea.hbm %s4386_s27, %s2761_s3 }
  0xed   : > { %663 = vst.msk [vmem:[#allocation2 + $0x4] sm:$0xf] %vm662_vm1, %v2765_v14  ;;  %664 = vst.msk [vmem:[#allocation2 + $0x8] sm:$0xf] %vm662_vm1, %v2766_v15  ;;  %v3332_v55 = vld [vmem:[#allocation6 + $0x18] sm:$0xff]   ;;  %v3333_v56 = vld [vmem:[#allocation6 + $0x68] sm:$0xff]  }
  0xee   : > { %v3334_v57 = vld [vmem:[#allocation6 + $0x20] sm:$0xff]   ;;  %v3335_v58 = vld [vmem:[#allocation6 + $0x70] sm:$0xff]   ;;  %v3336_v59 = vld [vmem:[#allocation6 + $0x28] sm:$0xff]  }
  0xef   : > { %2910 = vmatpush3.bf16.msra.mxu0 %v3304_v8  ;;  %2930 = vmatpush3.bf16.msra.mxu1 %v3305_v9  ;;  %v3337_v60 = vld [vmem:[#allocation6 + $0x78] sm:$0xff]   ;;  %v3339_v61 = vld [vmem:[#allocation6 + $0x30] sm:$0xff]   ;;  %s641_s26 = sand.u32 1, %s4384_s24  }
  0xf0   : > { %2911 = vmatprep.subr.bf16.mxu0 %v3712_v0  ;;  %2931 = vmatprep.subr.bf16.mxu1 %v3712_v0  ;;  %v3340_v62 = vld [vmem:[#allocation6 + $0x38] sm:$0xff]   ;;  %v2632_v4 = vld [vmem:[%s4319_s2] ss:$0 sm:$0xff]  ;;  %s642_s14 = scalar_lea.vmem [#allocation15], %s641_s26  ;;  %s2455_s25 = scalar_lea.sflag [#allocation5], %s641_s26 }
  0xf1   : > { %s2467_s1 = sshll.u32 %s642_s14, 4  ;;  %p4388_p1 = scmp.ne.s32.totalorder %s4385_s16, 0  ;;  %s4277_s1 = int_to_ptr.vmem [resolvable:$true] %s2467_s1 }
  0xf2   : > { %s3623_s7 = scalar_lea.vmem %s4277_s1, 16  ;;  %p3630_p5 = scmp.lt.s32.totalorder %s4277_s1, %s3628_s20 }
  0xf3   : > { %2912 = vmatpush3.bf16.msra.mxu0 %v3306_v10  ;;  %2932 = vmatpush3.bf16.msra.mxu1 %v3307_v11  ;;  %p3624_p13 = scmp.ne.s32.totalorder %s4277_s1, %s3623_s7 }
  0xf4   : > { %2913 = vmatprep.subr.bf16.mxu0 %v3712_v0  ;;  %2933 = vmatprep.subr.bf16.mxu1 %v3712_v0  ;;  %v666_v22 = vld [vmem:[#allocation2 + $0x4] sm:$0xf]  ;;  %v667_v23 = vld [vmem:[#allocation2 + $0x8] sm:$0xf] }
  0xf5   : > { %v2622_v25 = vcombine.low %v665_v20, %v666_v22  ;;  %v2623_v26 = vcombine.low %v667_v23, %v667_v23  ;;  %v2613_v27 = vcombine.low %v666_v22, %v667_v23  ;;  %p3625_p6 = pnand %p3624_p13, %p4388_p1 }
  0xf7   : > { %2914 = vmatpush3.bf16.msra.mxu0 %v3308_v16  ;;  %2934 = vmatpush3.bf16.msra.mxu1 %v3309_v17  ;;  %v802_v28 = vshrl.u32 %v2622_v25, 16  ;;  %v805_v29 = vshll.u32 %v2622_v25, 16  ;;  %v810_v30 = vshrl.u32 %v2623_v26, 16  ;;  %v813_v31 = vshll.u32 %v2623_v26, 16  ;;  %p3626_p9 = pneg %p3625_p6 }
  0xf8   : > { %2915 = vmatprep.subr.bf16.mxu0 %v3712_v0  ;;  %2935 = vmatprep.subr.bf16.mxu1 %v3712_v0 }
  0xf9   : > { %v804_v33 = vrot.slane %v802_v28, 3  ;;  %v807_v34 = vrot.slane %v805_v29, 4  ;;  %v812_v35 = vrot.slane %v810_v30, 3  ;;  %v815_v36 = vrot.slane %v813_v31, 4 }
  0xfb   : > { %2916 = vmatpush3.bf16.msra.mxu0 %v3310_v18  ;;  %2936 = vmatpush3.bf16.msra.mxu1 %v3311_v19  ;;  %v808_v39 = vor.u32 %v807_v34, %v804_v33  ;;  %v816_v40 = vor.u32 %v815_v36, %v812_v35  ;;  %v1045_v19 = vld [vmem:[#allocation2] sm:$0x8] }
  0xfc   : > { %2917 = vmatprep.subr.bf16.mxu0 %v3712_v0  ;;  %2937 = vmatprep.subr.bf16.mxu1 %v3712_v0 }
  0xfd   : > { %v817_v41 = vsel %vm800_vm2, %v808_v39, %v816_v40  ;;  %v3343_v40 = vld [vmem:[#allocation9 + $0x40] sm:$0xff]  }
  0xff   : > { %2918 = vmatpush3.bf16.msra.mxu0 %v3312_v21  ;;  %2938 = vmatpush3.bf16.msra.mxu1 %v3313_v24 }
 0x100   : > { %2943 = vmatprep.subr.bf16.mxu0 %v3712_v0  ;;  %2963 = vmatprep.subr.bf16.mxu1 %v3712_v0 }
 0x102   : > { %2920 = vmatmul.mubr.bf16.vlgmr.msra.gmra.mrb[0].mxu0 %v2613_v27  ;;  %2940 = vmatmul.mubr.bf16.vlgmr.msra.gmra.mrb[0].mxu1 %v817_v41  ;;  %v3344_v41 = vld [vmem:[#allocation9] sm:$0xff]  }
 0x103   : > { %2944 = vmatpush3.bf16.msra.mxu0 %v3316_v32  ;;  %2959 = vmatprep.mubr.msk.bf16.mxu0 %vm3714_vm0, %v3712_v0 }
 0x104   : > { %2945 = vmatprep.subr.bf16.mxu0 %v3712_v0  ;;  %2964 = vmatpush3.bf16.msra.mxu1 %v3323_v37 }
 0x105   : > { %2979 = vmatprep.mubr.msk.bf16.mxu1 %vm3714_vm0, %v3712_v0  ;;  %2965 = vmatprep.subr.bf16.mxu1 %v3712_v0 }
 0x107   : > { %2946 = vmatpush3.bf16.msra.mxu0 %v3317_v38 }
 0x108   : > { %2947 = vmatprep.subr.bf16.mxu0 %v3712_v0  ;;  %2966 = vmatpush3.bf16.msra.mxu1 %v3325_v42  ;;  %v3345_v42 = vld [vmem:[#allocation9 + $0x48] sm:$0xff]  }
 0x109   : > { %2967 = vmatprep.subr.bf16.mxu1 %v3712_v0 }
 0x10b   : > { %2948 = vmatpush3.bf16.msra.mxu0 %v3318_v43  ;;  %v3346_v43 = vld [vmem:[#allocation9 + $0x8] sm:$0xff]  }
 0x10c   : > { %2949 = vmatprep.subr.bf16.mxu0 %v3712_v0  ;;  %2968 = vmatpush3.bf16.msra.mxu1 %v3327_v44  ;;  %v3347_v44 = vld [vmem:[#allocation9 + $0x50] sm:$0xff]  }
 0x10d   : > { %2969 = vmatprep.subr.bf16.mxu1 %v3712_v0 }
 0x10f   : > { %2950 = vmatpush3.bf16.msra.mxu0 %v3319_v45  ;;  %v3348_v45 = vld [vmem:[#allocation9 + $0x10] sm:$0xff]  }
 0x110   : > { %2951 = vmatprep.subr.bf16.mxu0 %v3712_v0  ;;  %2970 = vmatpush3.bf16.msra.mxu1 %v3329_v52  ;;  %v3355_v52 = vld [vmem:[#allocation9 + $0x70] sm:$0xff]  }
 0x111   : > { %2971 = vmatprep.subr.bf16.mxu1 %v3712_v0 }
 0x113   : > { %2952 = vmatpush3.bf16.msra.mxu0 %v3320_v46  ;;  %v3349_v46 = vld [vmem:[#allocation9 + $0x58] sm:$0xff]  }
 0x114   : > { %2953 = vmatprep.subr.bf16.mxu0 %v3712_v0  ;;  %2972 = vmatpush3.bf16.msra.mxu1 %v3331_v54  ;;  %v3357_v54 = vld [vmem:[#allocation9 + $0x78] sm:$0xff]  }
 0x115   : > { %2973 = vmatprep.subr.bf16.mxu1 %v3712_v0 }
 0x117   : > { %2954 = vmatpush3.bf16.msra.mxu0 %v3321_v47  ;;  %v3350_v47 = vld [vmem:[#allocation9 + $0x18] sm:$0xff]  }
 0x118   : > { %2955 = vmatprep.subr.bf16.mxu0 %v3712_v0  ;;  %2974 = vmatpush3.bf16.msra.mxu1 %v3333_v56 }
 0x119   : > { %2975 = vmatprep.subr.bf16.mxu1 %v3712_v0 }
 0x11b   : > { %2956 = vmatpush3.bf16.msra.mxu0 %v3322_v48  ;;  %v3351_v48 = vld [vmem:[#allocation9 + $0x60] sm:$0xff]  }
 0x11c   : > { %2957 = vmatprep.subr.bf16.mxu0 %v3712_v0  ;;  %2976 = vmatpush3.bf16.msra.mxu1 %v3335_v58 }
 0x11d   : > { %2977 = vmatprep.subr.bf16.mxu1 %v3712_v0 }
 0x11f   : > { %2958 = vmatpush3.bf16.msra.mxu0 %v3324_v49  ;;  %v3352_v49 = vld [vmem:[#allocation9 + $0x20] sm:$0xff]  }
 0x120   : > { %2983 = vmatprep.subr.bf16.mxu0 %v3712_v0  ;;  %2978 = vmatpush3.bf16.msra.mxu1 %v3337_v60 }
 0x121   : > { %3003 = vmatprep.subr.bf16.mxu1 %v3712_v0 }
 0x122   : > { %2960 = vmatmul.mubr.bf16.vlgmr.msra.gmra.mrb[4].mxu0 %v2613_v27 }
 0x123   : > { %2984 = vmatpush3.bf16.msra.mxu0 %v3326_v50  ;;  %2999 = vmatprep.mubr.msk.bf16.mxu0 %vm3714_vm0, %v3712_v0  ;;  %v3353_v50 = vld [vmem:[#allocation9 + $0x68] sm:$0xff]  }
 0x124   : > { %2985 = vmatprep.subr.bf16.mxu0 %v3712_v0 }
 0x127   : > { %2986 = vmatpush3.bf16.msra.mxu0 %v3328_v51  ;;  %v3354_v51 = vld [vmem:[#allocation9 + $0x28] sm:$0xff]  }
 0x128   : > { %2987 = vmatprep.subr.bf16.mxu0 %v3712_v0 }
 0x12b   : > { %2988 = vmatpush3.bf16.msra.mxu0 %v3330_v53  ;;  %v3356_v53 = vld [vmem:[#allocation9 + $0x30] sm:$0xff]  }
 0x12c   : > { %2989 = vmatprep.subr.bf16.mxu0 %v3712_v0 }
 0x12f   : > { %2990 = vmatpush3.bf16.msra.mxu0 %v3332_v55  ;;  %v3359_v55 = vld [vmem:[#allocation9 + $0x38] sm:$0xff]  }
 0x130   : > { %2991 = vmatprep.subr.bf16.mxu0 %v3712_v0 }
 0x133   : > { %2992 = vmatpush3.bf16.msra.mxu0 %v3334_v57 }
 0x134   : > { %2993 = vmatprep.subr.bf16.mxu0 %v3712_v0 }
 0x137   : > { %2994 = vmatpush3.bf16.msra.mxu0 %v3336_v59 }
 0x138   : > { %2995 = vmatprep.subr.bf16.mxu0 %v3712_v0 }
 0x13b   : > { %2996 = vmatpush3.bf16.msra.mxu0 %v3339_v61  ;;  %v2663_v61 = vld [vmem:[%s4321_s4] ss:$0 sm:$0xff] }
 0x13c   : > { %2997 = vmatprep.subr.bf16.mxu0 %v3712_v0 }
 0x13f   : > { %2998 = vmatpush3.bf16.msra.mxu0 %v3340_v62 }
 0x140   : > { %3023 = vmatprep.subr.bf16.mxu0 %v3712_v0 }
 0x1d5   : > { %v789_v63 = vpop.f32.mrb[0].mxu0  ;;  %v901_v3 = vpop.f32.mrb[0].mxu1 }
 0x1d6   : > { %v2921_v1 = vpop.f32.mrb[1].mxu0  ;;  %v902_v6 = vadd.f32 %v901_v3, %v789_v63  ;;  %v2941_v7 = vpop.f32.mrb[1].mxu1 }
 0x1d7   : > { %v792_v2 = vpop.f32.mrb[2].mxu0  ;;  %v904_v8 = vpop.f32.mrb[2].mxu1 }
 0x1d8   : > { %v2922_v5 = vpop.f32.mrb[3].mxu0  ;;  %v915_v9 = vadd.f32 %v2632_v4, %v902_v6  ;;  %v905_v10 = vadd.f32 %v904_v8, %v792_v2  ;;  %v2942_v11 = vpop.f32.mrb[3].mxu1  ;;  %v2633_v2 = vld [vmem:[%s4323_s6] ss:$0 sm:$0xff] }
 0x1da   : > { %vm917_vm3 = vcmp.ge.f32.partialorder %v915_v9, 0.0  ;;  %v919_v12 = vmul.f32 0.01, %v915_v9  ;;  %v916_v13 = vadd.f32 %v2632_v4, %v905_v10 }
 0x1dc   : > { %v921_v14 = vsel %vm917_vm3, %v915_v9, %v919_v12  ;;  %vm918_vm4 = vcmp.ge.f32.partialorder %v916_v13, 0.0  ;;  %v920_v15 = vmul.f32 0.01, %v916_v13 }
 0x1dd   : > { %v2767_v16 = vpack.c.bf16 %v921_v14, %v921_v14 }
 0x1de   : > { %v922_v17 = vsel %vm918_vm4, %v916_v13, %v920_v15 }
 0x1df   : > { %1043 = vst [vmem:[#allocation2 + $0x4] sm:$0xf] %v2767_v16  ;;  %v2768_v18 = vpack.c.bf16 %v922_v17, %v922_v17  ;;  %v1314_v17 = vld [vmem:[#allocation2] sm:$0x8] }
 0x1e1   : > { %1044 = vst [vmem:[#allocation2 + $0x8] sm:$0xf] %v2768_v18 }
 0x1e6   : > { %v1046_v20 = vld [vmem:[#allocation2 + $0x4] sm:$0xf] }
 0x1e7   : > { %v2653_v21 = vcombine.low %v1045_v19, %v1046_v20 }
 0x1e8   : > { %v1047_v22 = vld [vmem:[#allocation2 + $0x8] sm:$0xf] }
 0x1e9   : > { %v2644_v23 = vcombine.low %v1046_v20, %v1047_v22  ;;  %v2654_v24 = vcombine.low %v1047_v22, %v1047_v22  ;;  %v1181_v25 = vshrl.u32 %v2653_v21, 16  ;;  %v1184_v26 = vshll.u32 %v2653_v21, 16  ;;  %v3362_v21 = vld [vmem:[#allocation11 + $0x40] sm:$0xff]  }
 0x1eb   : > { %2980 = vmatmul.mubr.bf16.vlgmr.msra.gmra.mrb[4].mxu1 %v2644_v23  ;;  %v1183_v27 = vrot.slane %v1181_v25, 3  ;;  %v1186_v28 = vrot.slane %v1184_v26, 4  ;;  %v1189_v29 = vshrl.u32 %v2654_v24, 16  ;;  %v1192_v30 = vshll.u32 %v2654_v24, 16  ;;  %v3363_v26 = vld [vmem:[#allocation11] sm:$0xff]  }
 0x1ec   : > { %3019 = vmatprep.mubr.msk.bf16.mxu1 %vm3714_vm0, %v3712_v0  ;;  %3004 = vmatpush3.bf16.msra.mxu1 %v3343_v40  ;;  %v3376_v40 = vld [vmem:[#allocation11 + $0x78] sm:$0xff]  }
 0x1ed   : > { %v1191_v31 = vrot.slane %v1189_v29, 3  ;;  %v1194_v32 = vrot.slane %v1192_v30, 4  ;;  %v1187_v33 = vor.u32 %v1186_v28, %v1183_v27  ;;  %3005 = vmatprep.subr.bf16.mxu1 %v3712_v0  ;;  %v3364_v27 = vld [vmem:[#allocation11 + $0x48] sm:$0xff]   ;;  %v3366_v30 = vld [vmem:[#allocation11 + $0x50] sm:$0xff]  }
 0x1ee   : > { %v3365_v29 = vld [vmem:[#allocation11 + $0x8] sm:$0xff]  }
 0x1ef   : > { %v1195_v34 = vor.u32 %v1194_v32, %v1191_v31  ;;  %v3367_v31 = vld [vmem:[#allocation11 + $0x10] sm:$0xff]   ;;  %v3368_v32 = vld [vmem:[#allocation11 + $0x58] sm:$0xff]  }
 0x1f0   : > { %3006 = vmatpush3.bf16.msra.mxu1 %v3345_v42 }
 0x1f1   : > { %v1196_v35 = vsel %vm800_vm2, %v1187_v33, %v1195_v34  ;;  %3007 = vmatprep.subr.bf16.mxu1 %v3712_v0  ;;  %v3369_v33 = vld [vmem:[#allocation11 + $0x18] sm:$0xff]   ;;  %v3370_v34 = vld [vmem:[#allocation11 + $0x60] sm:$0xff]  }
 0x1f2   : > { %3000 = vmatmul.mubr.bf16.vlgmr.msra.gmra.mrb[8].mxu0 %v1196_v35  ;;  %v3371_v35 = vld [vmem:[#allocation11 + $0x20] sm:$0xff]  }
 0x1f3   : > { %3039 = vmatprep.mubr.msk.bf16.mxu0 %vm3714_vm0, %v3712_v0  ;;  %3024 = vmatpush3.bf16.msra.mxu0 %v3344_v41  ;;  %v3378_v41 = vld [vmem:[#allocation11 + $0x38] sm:$0xff]  }
 0x1f4   : > { %3025 = vmatprep.subr.bf16.mxu0 %v3712_v0  ;;  %3008 = vmatpush3.bf16.msra.mxu1 %v3347_v44 }
 0x1f5   : > { %v4119_v36 = vpop.f32.mrb[4].mxu0  ;;  %3009 = vmatprep.subr.bf16.mxu1 %v3712_v0 }
 0x1f6   : > { %v2961_v37 = vpop.f32.mrb[5].mxu0  ;;  %v1029_v8 = vadd.f32 %v2633_v2, %v4119_v36  ;;  %v3372_v36 = vld [vmem:[#allocation11 + $0x68] sm:$0xff]  }
 0x1f7   : > { %v4123_v38 = vpop.f32.mrb[6].mxu0  ;;  %3026 = vmatpush3.bf16.msra.mxu0 %v3346_v43  ;;  %v3373_v37 = vld [vmem:[#allocation11 + $0x28] sm:$0xff]  }
 0x1f8   : > { %v2962_v39 = vpop.f32.mrb[7].mxu0  ;;  %3027 = vmatprep.subr.bf16.mxu0 %v3712_v0  ;;  %3010 = vmatpush3.bf16.msra.mxu1 %v3349_v46  ;;  %v1032_v11 = vadd.f32 %v2633_v2, %v4123_v38  ;;  %v3374_v38 = vld [vmem:[#allocation11 + $0x70] sm:$0xff]   ;;  %v3381_v2 = vld [vmem:[#allocation12 + $0x40] sm:$0xff]  }
 0x1f9   : > { %3011 = vmatprep.subr.bf16.mxu1 %v3712_v0  ;;  %v3375_v39 = vld [vmem:[#allocation11 + $0x30] sm:$0xff]  }
 0x1fb   : > { %3028 = vmatpush3.bf16.msra.mxu0 %v3348_v45 }
 0x1fc   : > { %3029 = vmatprep.subr.bf16.mxu0 %v3712_v0  ;;  %3012 = vmatpush3.bf16.msra.mxu1 %v3351_v48 }
 0x1fd   : > { %3013 = vmatprep.subr.bf16.mxu1 %v3712_v0 }
 0x1ff   : > { %3030 = vmatpush3.bf16.msra.mxu0 %v3350_v47  ;;  %v2685_v47 = vld [vmem:[%s4325_s8] ss:$0 sm:$0xff] }
 0x200   : > { %3031 = vmatprep.subr.bf16.mxu0 %v3712_v0  ;;  %3014 = vmatpush3.bf16.msra.mxu1 %v3353_v50 }
 0x201   : > { %3015 = vmatprep.subr.bf16.mxu1 %v3712_v0 }
 0x203   : > { %3032 = vmatpush3.bf16.msra.mxu0 %v3352_v49 }
 0x204   : > { %3033 = vmatprep.subr.bf16.mxu0 %v3712_v0  ;;  %3016 = vmatpush3.bf16.msra.mxu1 %v3355_v52 }
 0x205   : > { %3017 = vmatprep.subr.bf16.mxu1 %v3712_v0 }
 0x207   : > { %3034 = vmatpush3.bf16.msra.mxu0 %v3354_v51 }
 0x208   : > { %3035 = vmatprep.subr.bf16.mxu0 %v3712_v0  ;;  %3018 = vmatpush3.bf16.msra.mxu1 %v3357_v54 }
 0x209   : > { %3043 = vmatprep.subr.bf16.mxu1 %v3712_v0 }
 0x20b   : > { %3036 = vmatpush3.bf16.msra.mxu0 %v3356_v53 }
 0x20c   : > { %3037 = vmatprep.subr.bf16.mxu0 %v3712_v0 }
 0x20f   : > { %3038 = vmatpush3.bf16.msra.mxu0 %v3359_v55 }
 0x210   : > { %3063 = vmatprep.subr.bf16.mxu0 %v3712_v0 }
 0x2be   : > { %v1169_v56 = vpop.f32.mrb[4].mxu1 }
 0x2bf   : > { %v2981_v57 = vpop.f32.mrb[5].mxu1 }
 0x2c0   : > { %v1172_v58 = vpop.f32.mrb[6].mxu1 }
 0x2c1   : > { %v2982_v59 = vpop.f32.mrb[7].mxu1 }
 0x2c5   : > { %v1280_v60 = vpop.f32.mrb[8].mxu0 }
 0x2c6   : > { %v1281_v62 = vadd.f32 %v1280_v60, %v1169_v56  ;;  %v3001_v63 = vpop.f32.mrb[9].mxu0 }
 0x2c7   : > { %v1283_v1 = vpop.f32.mrb[10].mxu0 }
 0x2c8   : > { %v1294_v3 = vadd.f32 %v2663_v61, %v1281_v62  ;;  %v1284_v4 = vadd.f32 %v1283_v1, %v1172_v58  ;;  %v3002_v5 = vpop.f32.mrb[11].mxu0 }
 0x2ca   : > { %vm1296_vm5 = vcmp.ge.f32.partialorder %v1294_v3, 0.0  ;;  %v1298_v6 = vmul.f32 0.01, %v1294_v3  ;;  %v1295_v7 = vadd.f32 %v2663_v61, %v1284_v4  ;;  %v1571_v61 = vld [vmem:[#allocation2] sm:$0x8] }
 0x2cc   : > { %v1300_v9 = vsel %vm1296_vm5, %v1294_v3, %v1298_v6  ;;  %vm1297_vm6 = vcmp.ge.f32.partialorder %v1295_v7, 0.0  ;;  %v1299_v10 = vmul.f32 0.01, %v1295_v7 }
 0x2cd   : > { %v4149_v12 = vadd.f32 %v1300_v9, %v1029_v8  ;;  %v3382_v8 = vld [vmem:[#allocation12 + $0x48] sm:$0xff]  }
 0x2ce   : > { %v1301_v13 = vsel %vm1297_vm6, %v1295_v7, %v1299_v10  ;;  %v3383_v7 = vld [vmem:[#allocation12] sm:$0xff]   ;;  %v3385_v10 = vld [vmem:[#allocation12 + $0x8] sm:$0xff]  }
 0x2cf   : > { %v2769_v14 = vpack.c.bf16 %v4149_v12, %v4149_v12  ;;  %v4153_v15 = vadd.f32 %v1301_v13, %v1032_v11  ;;  %v3384_v11 = vld [vmem:[#allocation12 + $0x50] sm:$0xff]  }
 0x2d0   : > { %v3387_v13 = vld [vmem:[#allocation12 + $0x10] sm:$0xff]  }
 0x2d1   : > { %1312 = vst [vmem:[#allocation2 + $0x4] sm:$0xf] %v2769_v14  ;;  %v2770_v16 = vpack.c.bf16 %v4153_v15, %v4153_v15  ;;  %v3386_v14 = vld [vmem:[#allocation12 + $0x58] sm:$0xff]  }
 0x2d3   : > { %1313 = vst [vmem:[#allocation2 + $0x8] sm:$0xf] %v2770_v16  ;;  %v3389_v16 = vld [vmem:[#allocation12 + $0x18] sm:$0xff]  }
 0x2d8   : > { %v1315_v18 = vld [vmem:[#allocation2 + $0x4] sm:$0xf] }
 0x2d9   : > { %v2675_v19 = vcombine.low %v1314_v17, %v1315_v18  ;;  %v3388_v17 = vld [vmem:[#allocation12 + $0x60] sm:$0xff]  }
 0x2da   : > { %v1333_v20 = vld [vmem:[#allocation2 + $0x8] sm:$0xf] }
 0x2db   : > { %v2666_v22 = vcombine.low %v1315_v18, %v1333_v20  ;;  %v3361_v23 = vld [vmem:[#allocation2 + $0x8] ss:$0 sps:$4 sm:$0x77]   ;;  %v1453_v24 = vrot.slane %v2675_v19, 3  ;;  %v3391_v18 = vld [vmem:[#allocation12 + $0x20] sm:$0xff]   ;;  %v3390_v19 = vld [vmem:[#allocation12 + $0x68] sm:$0xff]  }
 0x2dc   : > { %v1454_v25 = vrot.slane %v3361_v23, 3  ;;  %v3393_v20 = vld [vmem:[#allocation12 + $0x28] sm:$0xff]   ;;  %v3394_v23 = vld [vmem:[#allocation12 + $0x78] sm:$0xff]  }
 0x2dd   : > { %3020 = vmatmul.mubr.bf16.vlgmr.msra.gmra.mrb[8].mxu1 %v2666_v22  ;;  %v3395_v22 = vld [vmem:[#allocation12 + $0x30] sm:$0xff]  }
 0x2de   : > { %3044 = vmatpush3.bf16.msra.mxu1 %v3362_v21  ;;  %3059 = vmatprep.mubr.msk.bf16.mxu1 %vm3714_vm0, %v3712_v0  ;;  %v1455_v28 = vsel %vm1452_vm7, %v1453_v24, %v1454_v25  ;;  %v3392_v21 = vld [vmem:[#allocation12 + $0x70] sm:$0xff]   ;;  %v3397_v24 = vld [vmem:[#allocation12 + $0x38] sm:$0xff]  }
 0x2df   : > { %3045 = vmatprep.subr.bf16.mxu1 %v3712_v0  ;;  %3040 = vmatmul.mubr.bf16.vlgmr.msra.gmra.mrb[12].mxu0 %v1455_v28 }
 0x2e0   : > { %3064 = vmatpush3.bf16.msra.mxu0 %v3363_v26  ;;  %3079 = vmatprep.mubr.msk.bf16.mxu0 %vm3714_vm0, %v3712_v0 }
 0x2e1   : > { %3065 = vmatprep.subr.bf16.mxu0 %v3712_v0 }
 0x2e2   : > { %3046 = vmatpush3.bf16.msra.mxu1 %v3364_v27 }
 0x2e3   : > { %3047 = vmatprep.subr.bf16.mxu1 %v3712_v0 }
 0x2e4   : > { %3066 = vmatpush3.bf16.msra.mxu0 %v3365_v29 }
 0x2e5   : > { %3067 = vmatprep.subr.bf16.mxu0 %v3712_v0 }
 0x2e6   : > { %3048 = vmatpush3.bf16.msra.mxu1 %v3366_v30  ;;  %v2707_v30 = vld [vmem:[%s4327_s10] ss:$0 sm:$0xff] }
 0x2e7   : > { %3049 = vmatprep.subr.bf16.mxu1 %v3712_v0 }
 0x2e8   : > { %3068 = vmatpush3.bf16.msra.mxu0 %v3367_v31 }
 0x2e9   : > { %3069 = vmatprep.subr.bf16.mxu0 %v3712_v0 }
 0x2ea   : > { %3050 = vmatpush3.bf16.msra.mxu1 %v3368_v32 }
 0x2eb   : > { %3051 = vmatprep.subr.bf16.mxu1 %v3712_v0 }
 0x2ec   : > { %3070 = vmatpush3.bf16.msra.mxu0 %v3369_v33 }
 0x2ed   : > { %3071 = vmatprep.subr.bf16.mxu0 %v3712_v0 }
 0x2ee   : > { %3052 = vmatpush3.bf16.msra.mxu1 %v3370_v34 }
 0x2ef   : > { %3053 = vmatprep.subr.bf16.mxu1 %v3712_v0 }
 0x2f0   : > { %3072 = vmatpush3.bf16.msra.mxu0 %v3371_v35 }
 0x2f1   : > { %3073 = vmatprep.subr.bf16.mxu0 %v3712_v0 }
 0x2f2   : > { %3054 = vmatpush3.bf16.msra.mxu1 %v3372_v36 }
 0x2f3   : > { %3055 = vmatprep.subr.bf16.mxu1 %v3712_v0 }
 0x2f4   : > { %3074 = vmatpush3.bf16.msra.mxu0 %v3373_v37 }
 0x2f5   : > { %3075 = vmatprep.subr.bf16.mxu0 %v3712_v0 }
 0x2f6   : > { %3056 = vmatpush3.bf16.msra.mxu1 %v3374_v38 }
 0x2f7   : > { %3057 = vmatprep.subr.bf16.mxu1 %v3712_v0 }
 0x2f8   : > { %3076 = vmatpush3.bf16.msra.mxu0 %v3375_v39 }
 0x2f9   : > { %3077 = vmatprep.subr.bf16.mxu0 %v3712_v0 }
 0x2fa   : > { %3058 = vmatpush3.bf16.msra.mxu1 %v3376_v40 }
 0x2fb   : > { %3083 = vmatprep.subr.bf16.mxu1 %v3712_v0 }
 0x2fc   : > { %3078 = vmatpush3.bf16.msra.mxu0 %v3378_v41 }
 0x2fd   : > { %3103 = vmatprep.subr.bf16.mxu0 %v3712_v0 }
 0x3b0   : > { %v1439_v42 = vpop.f32.mrb[8].mxu1 }
 0x3b1   : > { %v3021_v43 = vpop.f32.mrb[9].mxu1 }
 0x3b2   : > { %v1442_v44 = vpop.f32.mrb[10].mxu1  ;;  %v1539_v46 = vpop.f32.mrb[12].mxu0 }
 0x3b3   : > { %v3022_v45 = vpop.f32.mrb[11].mxu1  ;;  %v1540_v48 = vadd.f32 %v1539_v46, %v1439_v42  ;;  %v3041_v49 = vpop.f32.mrb[13].mxu0  ;;  %v1829_v46 = vld [vmem:[#allocation2] sm:$0xc] }
 0x3b4   : > { %v1542_v50 = vpop.f32.mrb[14].mxu0 }
 0x3b5   : > { %v1553_v51 = vadd.f32 %v2685_v47, %v1540_v48  ;;  %v1543_v52 = vadd.f32 %v1542_v50, %v1442_v44  ;;  %v3042_v53 = vpop.f32.mrb[15].mxu0  ;;  %v3398_v50 = vld [vmem:[%s4332_s15] sm:$0xff]  }
 0x3b7   : > { %vm1555_vm8 = vcmp.ge.f32.partialorder %v1553_v51, 0.0  ;;  %v1557_v54 = vmul.f32 0.01, %v1553_v51  ;;  %v1554_v55 = vadd.f32 %v2685_v47, %v1543_v52 }
 0x3b9   : > { %v1559_v56 = vsel %vm1555_vm8, %v1553_v51, %v1557_v54  ;;  %vm1556_vm9 = vcmp.ge.f32.partialorder %v1554_v55, 0.0  ;;  %v1558_v57 = vmul.f32 0.01, %v1554_v55  ;;  %v3408_v54 = vld [vmem:[#allocation14 + $0x40] sm:$0xff]  }
 0x3ba   : > { %v2771_v58 = vpack.c.bf16 %v1559_v56, %v1559_v56  ;;  %v3410_v56 = vld [vmem:[#allocation14 + $0x48] sm:$0xff]  }
 0x3bb   : > { %v1560_v59 = vsel %vm1556_vm9, %v1554_v55, %v1558_v57  ;;  %v3402_v57 = vld [vmem:[%s4332_s15 + $0x10] sm:$0xff]  }
 0x3bc   : > { %1569 = vst [vmem:[#allocation2 + $0x4] sm:$0xf] %v2771_v58  ;;  %v2772_v60 = vpack.c.bf16 %v1560_v59, %v1560_v59  ;;  %v3403_v58 = vld [vmem:[%s4332_s15 + $0x18] sm:$0xff]   ;;  %v3404_v59 = vld [vmem:[%s4332_s15 + $0x20] sm:$0xff]  }
 0x3be   : > { %1570 = vst [vmem:[#allocation2 + $0x8] sm:$0xf] %v2772_v60  ;;  %v3405_v60 = vld [vmem:[%s4332_s15 + $0x28] sm:$0xff]  }
 0x3c3   : > { %v1572_v62 = vld [vmem:[#allocation2 + $0x4] sm:$0xf] }
 0x3c4   : > { %v2697_v63 = vcombine.low %v1571_v61, %v1572_v62  ;;  %v3406_v61 = vld [vmem:[%s4332_s15 + $0x30] sm:$0xff]  }
 0x3c5   : > { %v1590_v1 = vld [vmem:[#allocation2 + $0x8] sm:$0xf] }
 0x3c6   : > { %v2688_v3 = vcombine.low %v1572_v62, %v1590_v1  ;;  %v3380_v4 = vld [vmem:[#allocation2 + $0x8] ss:$0 sps:$4 sm:$0x77]   ;;  %v1709_v5 = vrot.slane %v2697_v63, 3  ;;  %v3407_v62 = vld [vmem:[%s4332_s15 + $0x38] sm:$0xff]   ;;  %v3409_v63 = vld [vmem:[#allocation14] sm:$0xff]  }
 0x3c7   : > { %v1710_v6 = vrot.slane %v3380_v4, 3  ;;  %v3411_v1 = vld [vmem:[#allocation14 + $0x8] sm:$0xff]   ;;  %v3414_v4 = vld [vmem:[#allocation14 + $0x58] sm:$0xff]  }
 0x3c8   : > { %3060 = vmatmul.mubr.bf16.vlgmr.msra.gmra.mrb[12].mxu1 %v2688_v3  ;;  %v3413_v3 = vld [vmem:[#allocation14 + $0x10] sm:$0xff]  }
 0x3c9   : > { %3084 = vmatpush3.bf16.msra.mxu1 %v3381_v2  ;;  %3099 = vmatprep.mubr.msk.bf16.mxu1 %vm3714_vm0, %v3712_v0  ;;  %v1711_v9 = vsel %vm1452_vm7, %v1709_v5, %v1710_v6  ;;  %v3412_v2 = vld [vmem:[#allocation14 + $0x50] sm:$0xff]   ;;  %v3415_v5 = vld [vmem:[#allocation14 + $0x18] sm:$0xff]   ;;  %v3416_v6 = vld [vmem:[#allocation14 + $0x60] sm:$0xff]  }
 0x3ca   : > { %3085 = vmatprep.subr.bf16.mxu1 %v3712_v0  ;;  %3080 = vmatmul.mubr.bf16.vlgmr.msra.gmra.mrb[16].mxu0 %v1711_v9  ;;  %v3419_v9 = vld [vmem:[#allocation14 + $0x28] sm:$0xff]  }
 0x3cb   : > { %3104 = vmatpush3.bf16.msra.mxu0 %v3383_v7  ;;  %3119 = vmatprep.mubr.msk.bf16.mxu0 %vm3714_vm0, %v3712_v0  ;;  %v3417_v7 = vld [vmem:[#allocation14 + $0x20] sm:$0xff]  }
 0x3cc   : > { %3105 = vmatprep.subr.bf16.mxu0 %v3712_v0 }
 0x3cd   : > { %3086 = vmatpush3.bf16.msra.mxu1 %v3382_v8  ;;  %v3418_v8 = vld [vmem:[#allocation14 + $0x68] sm:$0xff]  }
 0x3ce   : > { %3087 = vmatprep.subr.bf16.mxu1 %v3712_v0 }
 0x3cf   : > { %3106 = vmatpush3.bf16.msra.mxu0 %v3385_v10  ;;  %v3420_v10 = vld [vmem:[#allocation14 + $0x70] sm:$0xff]  }
 0x3d0   : > { %3107 = vmatprep.subr.bf16.mxu0 %v3712_v0 }
 0x3d1   : > { %3088 = vmatpush3.bf16.msra.mxu1 %v3384_v11  ;;  %v3421_v11 = vld [vmem:[#allocation14 + $0x30] sm:$0xff]  }
 0x3d2   : > { %3089 = vmatprep.subr.bf16.mxu1 %v3712_v0 }
 0x3d3   : > { %3108 = vmatpush3.bf16.msra.mxu0 %v3387_v13  ;;  %v3422_v13 = vld [vmem:[#allocation14 + $0x78] sm:$0xff]  }
 0x3d4   : > { %3109 = vmatprep.subr.bf16.mxu0 %v3712_v0 }
 0x3d5   : > { %3090 = vmatpush3.bf16.msra.mxu1 %v3386_v14  ;;  %v3424_v14 = vld [vmem:[#allocation14 + $0x38] sm:$0xff]  }
 0x3d6   : > { %3091 = vmatprep.subr.bf16.mxu1 %v3712_v0 }
 0x3d7   : > { %3110 = vmatpush3.bf16.msra.mxu0 %v3389_v16 }
 0x3d8   : > { %3111 = vmatprep.subr.bf16.mxu0 %v3712_v0 }
 0x3d9   : > { %3092 = vmatpush3.bf16.msra.mxu1 %v3388_v17 }
 0x3da   : > { %3093 = vmatprep.subr.bf16.mxu1 %v3712_v0 }
 0x3db   : > { %3112 = vmatpush3.bf16.msra.mxu0 %v3391_v18 }
 0x3dc   : > { %3113 = vmatprep.subr.bf16.mxu0 %v3712_v0 }
 0x3dd   : > { %3094 = vmatpush3.bf16.msra.mxu1 %v3390_v19 }
 0x3de   : > { %3095 = vmatprep.subr.bf16.mxu1 %v3712_v0 }
 0x3df   : > { %3114 = vmatpush3.bf16.msra.mxu0 %v3393_v20 }
 0x3e0   : > { %3115 = vmatprep.subr.bf16.mxu0 %v3712_v0 }
 0x3e1   : > { %3096 = vmatpush3.bf16.msra.mxu1 %v3392_v21  ;;  %v2729_v21 = vld [vmem:[%s4329_s12] ss:$0 sm:$0xff] }
 0x3e2   : > { %3097 = vmatprep.subr.bf16.mxu1 %v3712_v0 }
 0x3e3   : > { %3116 = vmatpush3.bf16.msra.mxu0 %v3395_v22 }
 0x3e4   : > { %3117 = vmatprep.subr.bf16.mxu0 %v3712_v0 }
 0x3e5   : > { %3098 = vmatpush3.bf16.msra.mxu1 %v3394_v23 }
 0x3e6   : > { %3123 = vmatprep.subr.bf16.mxu1 %v3712_v0 }
 0x3e7   : > { %3118 = vmatpush3.bf16.msra.mxu0 %v3397_v24 }
 0x3e8   : > { %3143 = vmatprep.subr.bf16.mxu0 %v3712_v0 }
 0x49b   : > { %v1696_v25 = vpop.f32.mrb[12].mxu1 }
 0x49c   : > { %v3061_v26 = vpop.f32.mrb[13].mxu1 }
 0x49d   : > { %v1699_v27 = vpop.f32.mrb[14].mxu1  ;;  %v1795_v29 = vpop.f32.mrb[16].mxu0 }
 0x49e   : > { %v3062_v28 = vpop.f32.mrb[15].mxu1  ;;  %v1796_v31 = vadd.f32 %v1795_v29, %v1696_v25  ;;  %v3081_v32 = vpop.f32.mrb[17].mxu0 }
 0x49f   : > { %v1798_v33 = vpop.f32.mrb[18].mxu0 }
 0x4a0   : > { %v1809_v34 = vadd.f32 %v2707_v30, %v1796_v31  ;;  %v1799_v35 = vadd.f32 %v1798_v33, %v1699_v27  ;;  %v3082_v36 = vpop.f32.mrb[19].mxu0 }
 0x4a2   : > { %vm1811_vm10 = vcmp.ge.f32.partialorder %v1809_v34, 0.0  ;;  %v1813_v37 = vmul.f32 0.01, %v1809_v34  ;;  %v1810_v38 = vadd.f32 %v2707_v30, %v1799_v35 }
 0x4a4   : > { %v1815_v39 = vsel %vm1811_vm10, %v1809_v34, %v1813_v37  ;;  %vm1812_vm11 = vcmp.ge.f32.partialorder %v1810_v38, 0.0  ;;  %v1814_v40 = vmul.f32 0.01, %v1810_v38  ;;  %v2198_v34 = vld [vmem:[#allocation2] sm:$0xc] }
 0x4a5   : > { %v1817_v41 = vadd.f32 %v1815_v39, %v4149_v12 }
 0x4a6   : > { %v1816_v42 = vsel %vm1812_vm11, %v1810_v38, %v1814_v40 }
 0x4a7   : > { %v2773_v43 = vpack.c.bf16 %v1817_v41, %v1817_v41  ;;  %v1818_v44 = vadd.f32 %v1816_v42, %v4153_v15  ;;  %v3401_v15 = vld [vmem:[%s4332_s15 + $0x8] sm:$0xff]  }
 0x4a9   : > { %1827 = vst [vmem:[#allocation2 + $0x4] sm:$0xf] %v2773_v43  ;;  %v2774_v45 = vpack.c.bf16 %v1818_v44, %v1818_v44 }
 0x4ab   : > { %1828 = vst [vmem:[#allocation2 + $0x8] sm:$0xf] %v2774_v45 }
 0x4b0   : > { %v1830_v47 = vld [vmem:[#allocation2 + $0x4] sm:$0xf] }
 0x4b1   : > { %v2719_v48 = vcombine.low %v1829_v46, %v1830_v47 }
 0x4b2   : > { %v1848_v49 = vld [vmem:[#allocation2 + $0x8] sm:$0xf] }
 0x4b3   : > { %v2710_v51 = vcombine.low %v1830_v47, %v1848_v49  ;;  %v3400_v52 = vld [vmem:[#allocation2 + $0x8] ss:$0 sps:$4 sm:$0x33]   ;;  %v1968_v53 = vrot.slane %v2719_v48, 2 }
 0x4b4   : > { %v1969_v12 = vrot.slane %v3400_v52, 2  ;;  %v2760_v52 = vld [vmem:[%s4382_s17] ss:$0 sm:$0xff]  ;;  %s3629_s17 = scalar_lea.vmem %s3628_s20, 32 }
 0x4b5   : > { %3100 = vmatmul.mubr.bf16.vlgmr.msra.gmra.mrb[16].mxu1 %v2710_v51  ;;  %p3631_p0 = scmp.lt.s32.totalorder %s3629_s17, %s3623_s7 }
 0x4b6   : > { %3124 = vmatpush3.bf16.msra.mxu1 %v3398_v50  ;;  %3139 = vmatprep.mubr.msk.bf16.mxu1 %vm3714_vm0, %v3712_v0  ;;  %v1970_v55 = vsel %vm1967_vm12, %v1968_v53, %v1969_v12 }
 0x4b7   : > { %3125 = vmatprep.subr.bf16.mxu1 %v3712_v0  ;;  %3120 = vmatmul.mubr.bf16.vlgmr.msra.gmra.mrb[20].mxu0 %v1970_v55  ;;  %p3632_p10 = por %p3631_p0, %p3630_p5 }
 0x4b8   : > { %3144 = vmatpush3.bf16.msra.mxu0 %v3408_v54  ;;  %3159 = vmatprep.mubr.msk.bf16.mxu0 %vm3714_vm0, %v3712_v0 }
 0x4b9   : > { %3145 = vmatprep.subr.bf16.mxu0 %v3712_v0  ;;  %p3633_p2 = pnand %p3632_p10, %p3626_p9 }
 0x4ba   : > { %3126 = vmatpush3.bf16.msra.mxu1 %v3401_v15  ;;  %v2730_v15 = vld [vmem:[%s4383_s0] ss:$0 sm:$0xff] }
 0x4bb   : > { %3127 = vmatprep.subr.bf16.mxu1 %v3712_v0 }
 0x4bc   : > { %3146 = vmatpush3.bf16.msra.mxu0 %v3410_v56 }
 0x4bd   : > { %3147 = vmatprep.subr.bf16.mxu0 %v3712_v0 }
 0x4be   : > { %3128 = vmatpush3.bf16.msra.mxu1 %v3402_v57 }
 0x4bf   : > { %3129 = vmatprep.subr.bf16.mxu1 %v3712_v0 }
 0x4c0   : > { %3148 = vmatpush3.bf16.msra.mxu0 %v3412_v2 }
 0x4c1   : > { %3149 = vmatprep.subr.bf16.mxu0 %v3712_v0 }
 0x4c2   : > { %3130 = vmatpush3.bf16.msra.mxu1 %v3403_v58 }
 0x4c3   : > { %3131 = vmatprep.subr.bf16.mxu1 %v3712_v0 }
 0x4c4   : > { %3150 = vmatpush3.bf16.msra.mxu0 %v3414_v4 }
 0x4c5   : > { %3151 = vmatprep.subr.bf16.mxu0 %v3712_v0 }
 0x4c6   : > { %3132 = vmatpush3.bf16.msra.mxu1 %v3404_v59 }
 0x4c7   : > { %3133 = vmatprep.subr.bf16.mxu1 %v3712_v0 }
 0x4c8   : > { %3152 = vmatpush3.bf16.msra.mxu0 %v3416_v6 }
 0x4c9   : > { %3153 = vmatprep.subr.bf16.mxu0 %v3712_v0 }
 0x4ca   : > { %3134 = vmatpush3.bf16.msra.mxu1 %v3405_v60 }
 0x4cb   : > { %3135 = vmatprep.subr.bf16.mxu1 %v3712_v0 }
 0x4cc   : > { %3154 = vmatpush3.bf16.msra.mxu0 %v3418_v8 }
 0x4cd   : > { %3155 = vmatprep.subr.bf16.mxu0 %v3712_v0 }
 0x4ce   : > { %3136 = vmatpush3.bf16.msra.mxu1 %v3406_v61 }
 0x4cf   : > { %3137 = vmatprep.subr.bf16.mxu1 %v3712_v0 }
 0x4d0   : > { %3156 = vmatpush3.bf16.msra.mxu0 %v3420_v10 }
 0x4d1   : > { %3157 = vmatprep.subr.bf16.mxu0 %v3712_v0 }
 0x4d2   : > { %3138 = vmatpush3.bf16.msra.mxu1 %v3407_v62 }
 0x4d3   : > { %3163 = vmatprep.subr.bf16.mxu1 %v3712_v0 }
 0x4d4   : > { %3158 = vmatpush3.bf16.msra.mxu0 %v3422_v13 }
 0x4d5   : > { %3140 = vmatmul.mubr.bf16.vlgmr.msra.gmra.mrb[20].mxu1 %v2710_v51 }
 0x4d6   : > { %3164 = vmatpush3.bf16.msra.mxu1 %v3409_v63  ;;  %3179 = vmatprep.mubr.msk.bf16.mxu1 %vm3714_vm0, %v3712_v0 }
 0x4d7   : > { %3165 = vmatprep.subr.bf16.mxu1 %v3712_v0 }
 0x4da   : > { %3166 = vmatpush3.bf16.msra.mxu1 %v3411_v1 }
 0x4db   : > { %3167 = vmatprep.subr.bf16.mxu1 %v3712_v0 }
 0x4de   : > { %3168 = vmatpush3.bf16.msra.mxu1 %v3413_v3 }
 0x4df   : > { %3169 = vmatprep.subr.bf16.mxu1 %v3712_v0 }
 0x4e2   : > { %3170 = vmatpush3.bf16.msra.mxu1 %v3415_v5 }
 0x4e3   : > { %3171 = vmatprep.subr.bf16.mxu1 %v3712_v0 }
 0x4e6   : > { %3172 = vmatpush3.bf16.msra.mxu1 %v3417_v7 }
 0x4e7   : > { %3173 = vmatprep.subr.bf16.mxu1 %v3712_v0 }
 0x4ea   : > { %3174 = vmatpush3.bf16.msra.mxu1 %v3419_v9 }
 0x4eb   : > { %3175 = vmatprep.subr.bf16.mxu1 %v3712_v0 }
 0x4ee   : > { %3176 = vmatpush3.bf16.msra.mxu1 %v3421_v11 }
 0x4ef   : > { %3177 = vmatprep.subr.bf16.mxu1 %v3712_v0 }
 0x4f2   : > { %3178 = vmatpush3.bf16.msra.mxu1 %v3424_v14 }
 0x588   : > { %v1954_v16 = vpop.f32.mrb[16].mxu1 }
 0x589   : > { %v3101_v17 = vpop.f32.mrb[17].mxu1 }
 0x58a   : > { %v1957_v18 = vpop.f32.mrb[18].mxu1  ;;  %v2054_v20 = vpop.f32.mrb[20].mxu0 }
 0x58b   : > { %v3102_v19 = vpop.f32.mrb[19].mxu1  ;;  %v2055_v22 = vadd.f32 %v2054_v20, %v1954_v16  ;;  %v3121_v23 = vpop.f32.mrb[21].mxu0 }
 0x58c   : > { %v2057_v24 = vpop.f32.mrb[22].mxu0 }
 0x58d   : > { %v2068_v25 = vadd.f32 %v2729_v21, %v2055_v22  ;;  %v2058_v26 = vadd.f32 %v2057_v24, %v1957_v18  ;;  %v3122_v27 = vpop.f32.mrb[23].mxu0 }
 0x58f   : > { %vm2070_vm13 = vcmp.ge.f32.partialorder %v2068_v25, 0.0  ;;  %v2072_v0 = vmul.f32 0.01, %v2068_v25  ;;  %v2069_v28 = vadd.f32 %v2729_v21, %v2058_v26 }
 0x591   : > { %v2074_v29 = vsel %vm2070_vm13, %v2068_v25, %v2072_v0  ;;  %vm2071_vm14 = vcmp.ge.f32.partialorder %v2069_v28, 0.0  ;;  %v2073_v30 = vmul.f32 0.01, %v2069_v28 }
 0x592   : > { %v2775_v31 = vpack.c.bf16 %v2074_v29, %v2074_v29 }
 0x593   : > { %v2075_v32 = vsel %vm2071_vm14, %v2069_v28, %v2073_v30 }
 0x594   : > { %2196 = vst [vmem:[#allocation2 + $0x4] sm:$0xf] %v2775_v31  ;;  %v2776_v33 = vpack.c.bf16 %v2075_v32, %v2075_v32 }
 0x596   : > { %2197 = vst [vmem:[#allocation2 + $0x8] sm:$0xf] %v2776_v33 }
 0x59b   : > { %v2199_v35 = vld [vmem:[#allocation2 + $0x4] sm:$0xf] }
 0x59c   : > { %v2750_v36 = vcombine.low %v2198_v34, %v2199_v35 }
 0x59d   : > { %v2217_v37 = vld [vmem:[#allocation2 + $0x8] sm:$0xf] }
 0x59e   : > { %v2741_v38 = vcombine.low %v2199_v35, %v2217_v37  ;;  %v3426_v39 = vld [vmem:[#allocation2 + $0x8] ss:$0 sps:$4 sm:$0x33]   ;;  %v2336_v40 = vrot.slane %v2750_v36, 2 }
 0x59f   : > { %v2337_v41 = vrot.slane %v3426_v39, 2 }
 0x5a0   : > { %3160 = vmatmul.mubr.bf16.vlgmr.msra.gmra.mrb[24].mxu0 %v2741_v38 }
 0x5a1   : > { %v2338_v42 = vsel %vm1967_vm12, %v2336_v40, %v2337_v41 }
 0x5a2   : > { %3180 = vmatmul.mubr.bf16.vlgmr.msra.gmra.mrb[24].mxu1 %v2338_v42 }
 0x5a8   : > { %v2181_v43 = vpop.f32.mrb[20].mxu1 }
 0x5a9   : > { %v3141_v44 = vpop.f32.mrb[21].mxu1  ;;  %v2182_v60 = vadd.f32 %v2730_v15, %v2181_v43 }
 0x5aa   : > { %v2184_v45 = vpop.f32.mrb[22].mxu1 }
 0x5ab   : > { %v3142_v46 = vpop.f32.mrb[23].mxu1  ;;  %v2185_v63 = vadd.f32 %v2730_v15, %v2184_v45 }
 0x673   : > { %v2323_v47 = vpop.f32.mrb[24].mxu0 }
 0x674   : > { %v3161_v48 = vpop.f32.mrb[25].mxu0 }
 0x675   : > { %v2326_v49 = vpop.f32.mrb[26].mxu0  ;;  %v2422_v51 = vpop.f32.mrb[24].mxu1 }
 0x676   : > { %v3162_v50 = vpop.f32.mrb[27].mxu0  ;;  %v2423_v53 = vadd.f32 %v2422_v51, %v2323_v47  ;;  %v3181_v12 = vpop.f32.mrb[25].mxu1 }
 0x677   : > { %v2425_v54 = vpop.f32.mrb[26].mxu1 }
 0x678   : > { %v2436_v55 = vadd.f32 %v2760_v52, %v2423_v53  ;;  %v2426_v56 = vadd.f32 %v2425_v54, %v2326_v49  ;;  %v3182_v57 = vpop.f32.mrb[27].mxu1 }
 0x67a   : > { %vm2438_vm15 = vcmp.ge.f32.partialorder %v2436_v55, 0.0  ;;  %v2440_v58 = vmul.f32 0.01, %v2436_v55  ;;  %v2437_v59 = vadd.f32 %v2760_v52, %v2426_v56 }
 0x67c   : > { %v2442_v61 = vsel %vm2438_vm15, %v2436_v55, %v2440_v58  ;;  %vm2439_vm0 = vcmp.ge.f32.partialorder %v2437_v59, 0.0  ;;  %v2441_v62 = vmul.f32 0.01, %v2437_v59 }
 0x67d   : > { %v2444_v1 = vadd.f32 %v2442_v61, %v2182_v60 }
 0x67e   : > { %v2443_v2 = vsel %vm2439_vm0, %v2437_v59, %v2441_v62 }
 0x67f   : > { %v2445_v3 = vadd.f32 %v2443_v2, %v2185_v63 }
 0x681   : > { %v2446_v4 = vmax.f32 %v2444_v1, %v2445_v3 }
 0x683   : > { %v2447_v5 = vrot.slane %v2446_v4, 4 }
 0x685   : > { %v2448_v6 = vmax.f32 %v2446_v4, %v2447_v5 }
 0x687   : > { %v2449_v7 = vrot.slane %v2448_v6, 2 }
 0x689   : > { %v2450_v8 = vmax.f32 %v2448_v6, %v2449_v7 }
 0x68b   : > { %v2451_v9 = vrot.slane %v2450_v8, 1 }
 0x68d   : > { %v2452_v10 = vmax.f32 %v2450_v8, %v2451_v9 }
 0x68f   : > { %2453 = vst [vmem:[%s642_s14] sm:$0x1] %v2452_v10 }
 0x690   : > { %3636 = shalt.err (!%p3633_p2)
}
 0x691   : > { %s3637_s21 = scalar_lea.hbm %s4275_s18, 16  ;;  %s3641_s24 = scalar_lea.hbm %s4387_s23, 32 }
 0x692   : > { %p3638_p3 = scmp.ne.s32.totalorder %s4275_s18, %s3637_s21  ;;  %p3642_p7 = scmp.lt.u32.totalorder %s4275_s18, %s4387_s23 }
 0x693   : > { %p3643_p8 = scmp.lt.u32.totalorder %s3641_s24, %s3637_s21  ;;  %p3645_p13 = scmp.lt.u32.totalorder %s3637_s21, %s4275_s18 }
 0x694   : > { %p3639_p4 = pnand %p3638_p3, %p4388_p1 }
 0x695   : > { %p3644_p11 = por %p3643_p8, %p3642_p7 }
 0x696   : > { %p3640_p12 = pneg %p3639_p4 }
 0x697   : > { %p3646_p6 = por %p3645_p13, %p3644_p11 }
 0x699   : > { %p3647_p9 = pnand %p3646_p6, %p3640_p12 }
 0x69b   : > { %3650 = shalt.err (!%p3647_p9)
}
 0x69c   : > { %3211 = dma.vmem_to_hbm [thread:$0]  (%p4388_p1), %s4277_s1, 16, %s4275_s18, %s2455_s25  }
 0x69d PF: > { %s4389_s14 = sld [smem:[#allocation24_spill]]  ;;  %s4390_s22 = sld [smem:[#allocation21_spill]] }
 0x69e   : > { %s4391_s30 = sld [smem:[#allocation28_spill]] }
 0x6a3   : > { %p3253_p5 = scmp.ge.s32.totalorder %s4389_s14, 2  ;;  %s2479_s27 = sand.u32 1, %s4390_s22  }
 0x6a4   : > { %p4392_p0 = scmp.ne.s32.totalorder %s4391_s30, 0  ;;  %s2480_s7 = scalar_lea.sflag [#allocation5], %s2479_s27 }
 0x6a6   : > { %p3236_p10 = pnand %p3253_p5, %p4392_p0 }
 0x6a8   : > { %3684 = dma.done.wait (!%p3236_p10), %s2480_s7, 16  }
 0x6a9   : > { %3686 = vsyncadd (!%p3236_p10), %s2480_s7, 4294967280  ;;  %s4393_s27 = sld [smem:[#allocation25_spill]]  ;;  %s4394_s24 = sld [smem:[#allocation22_spill]] }
 0x6aa   : > { %s4395_s25 = sld [smem:[#allocation23_spill]]  ;;  %s4396_s26 = sld [smem:[#allocation26_spill]] }
 0x6af   : > { %p31_p2 = scmp.ge.s32.totalorder %s4393_s27, 4  }
 0x6b1   :  { %33 = sbr.rel (!%p31_p2) target bundleno = 15 (0xf), region = 158 }
 0x6b8   :  { %2484 = vsyncpa [#allocation4], 1 }
 0x6b9   :  { %2486 = vsyncpa [#allocation4 + $0x1], 1 }
 0x6ba   :  { %2487 = vsyncpa [#allocation7], 1 }
 0x6bb   :  { %2488 = vsyncpa [#allocation10], 1 }
 0x6bc   :  { %2489 = vsyncpa [#allocation13], 1 }
 0x6bd   :  { %2490 = vsyncpa [#allocation5], 1 }
 0x6be   :  { %2492 = vsyncpa [#allocation5 + $0x1], 1 }

</bundles_post_ra>
